<compile_context>
chip_gen: v6e
topology: v6e:2x2x1
jax: 0.10.0
libtpu: 0.0.40
codegen_flags: <defaults>
</compile_context>

<pallas_src>
import functools

import jax
import jax.numpy as jnp
import numpy as np
from jax.experimental import pallas as pl
from jax.experimental.pallas import tpu as pltpu


def lstm_fc_kernel(x_ref, wih_ref, whh_ref, b_ref, wfc_ref, bfc_ref,
                   out_ref, gx_sc, *, seq_len):
    """Fused LSTM recurrence + final Linear, single invocation.

    x_ref   : (S*Bp, E)   time-major embedded input, batch padded to Bp
    wih_ref : (E, 4H)     input->gates weights (torch W_ih transposed)
    whh_ref : (H, 4H)     hidden->gates weights (torch W_hh transposed)
    b_ref   : (1, 4H)     b_ih + b_hh
    wfc_ref : (H, Vp)     final Linear weights, vocab padded to lane multiple
    bfc_ref : (1, Vp)
    out_ref : (Bp, Vp)    logits for the last timestep
    gx_sc   : (S*Bp, 4H)  VMEM scratch: hoisted input projection
    """
    Bp = out_ref.shape[0]
    H = whh_ref.shape[0]

    # Hoisted input projection: one big MXU matmul (M = S*Bp), bias folded in.
    gx_sc[...] = (jnp.dot(x_ref[...], wih_ref[...],
                          preferred_element_type=jnp.float32)
                  + b_ref[...])

    whh = whh_ref[...]  # load once; reused every step

    def step(t, carry):
        h, c = carry
        off = pl.multiple_of(t * Bp, 8)          # sublane-aligned slice start
        gates = (gx_sc[pl.ds(off, Bp), :]
                 + jnp.dot(h, whh, preferred_element_type=jnp.float32))
        # PyTorch LSTM gate layout: [i, f, g, o] along the 4H axis
        # (H = 128 -> each slice is lane-aligned).
        i_g = jax.nn.sigmoid(gates[:, 0 * H:1 * H])
        f_g = jax.nn.sigmoid(gates[:, 1 * H:2 * H])
        g_g = jnp.tanh(gates[:, 2 * H:3 * H])
        o_g = jax.nn.sigmoid(gates[:, 3 * H:4 * H])
        c_new = f_g * c + i_g * g_g
        h_new = o_g * jnp.tanh(c_new)
        return h_new, c_new

    h0 = jnp.zeros((Bp, H), jnp.float32)
    c0 = jnp.zeros((Bp, H), jnp.float32)
    h_last, _ = jax.lax.fori_loop(0, seq_len, step, (h0, c0), unroll=True)

    # Fused final Linear (H -> padded vocab); lane-dense output store.
    out_ref[...] = (jnp.dot(h_last, wfc_ref[...],
                            preferred_element_type=jnp.float32)
                    + bfc_ref[...]).astype(out_ref.dtype)


def _round_up(x, m):
    return ((x + m - 1) // m) * m


@jax.jit
def simple_llm_forward(x_tokens, params):
    """x_tokens: (B, S) int32 token indices. Returns (B, vocab) f32 logits."""
    emb = params["embedding"]          # (V, E)
    w_ih = params["w_ih"]              # (E, 4H)  (transposed vs torch's (4H, E))
    w_hh = params["w_hh"]              # (H, 4H)
    b = params["b"]                    # (1, 4H)  = b_ih + b_hh
    w_fc = params["w_fc"]              # (H, V)
    b_fc = params["b_fc"]              # (1, V)

    B, S = x_tokens.shape
    E = emb.shape[1]
    H = w_hh.shape[0]
    V = w_fc.shape[1]

    Bp = _round_up(B, 8)      # f32 sublane multiple for the per-step matmul M dim
    Vp = _round_up(V, 128)    # lane-dense output / MXU-shaped N for the final FC

    # Embedding gather directly in time-major order (no separate transpose
    # pass), then pad the batch dim with zero rows (sliced away below).
    # TODO(synk): the embedding gather stays in XLA; an in-kernel gather would
    # need a manual DMA-gather and isn't worth it at these sizes.
    x_tme = jnp.take(emb, x_tokens.T, axis=0)            # (S, B, E)
    if Bp != B:
        x_tme = jnp.pad(x_tme, ((0, 0), (0, Bp - B), (0, 0)))
    x2d = x_tme.reshape(S * Bp, E)                       # (S*Bp, E)

    # Pad the vocab dim of the output projection to a lane multiple.
    w_fc_p = jnp.pad(w_fc, ((0, 0), (0, Vp - V))) if Vp != V else w_fc
    b_fc_p = jnp.pad(b_fc, ((0, 0), (0, Vp - V))) if Vp != V else b_fc

    # No grid: inputs, weights and output all map whole into VMEM once
    # (single-buffered); the recurrence runs as an unrolled in-kernel loop.
    # TODO(synk): at realistic H/V (e.g. V~50K) tile the final FC over V and
    # use bf16 weights; at these toy sizes everything fits in VMEM as f32.
    out = pl.pallas_call(
        functools.partial(lstm_fc_kernel, seq_len=S),
        out_shape=jax.ShapeDtypeStruct((Bp, Vp), jnp.float32),
        scratch_shapes=[pltpu.VMEM((S * Bp, 4 * H), jnp.float32)],
    )(x2d, w_ih, w_hh, b, w_fc_p, b_fc_p)
    return out[:B, :V]


def reference_forward(x_tokens, params):
    """Pure-JAX reference matching torch LSTM semantics."""
    emb = params["embedding"]
    w_ih, w_hh, b = params["w_ih"], params["w_hh"], params["b"]
    w_fc, b_fc = params["w_fc"], params["b_fc"]
    B, S = x_tokens.shape
    H = w_hh.shape[0]

    x = jnp.take(emb, x_tokens, axis=0)  # (B, S, E)
    h = jnp.zeros((B, H), jnp.float32)
    c = jnp.zeros((B, H), jnp.float32)
    for t in range(S):
        gates = x[:, t, :] @ w_ih + h @ w_hh + b
        i_g = jax.nn.sigmoid(gates[:, 0 * H:1 * H])
        f_g = jax.nn.sigmoid(gates[:, 1 * H:2 * H])
        g_g = jnp.tanh(gates[:, 2 * H:3 * H])
        o_g = jax.nn.sigmoid(gates[:, 3 * H:4 * H])
        c = f_g * c + i_g * g_g
        h = o_g * jnp.tanh(c)
    return h @ w_fc + b_fc


def init_params(key, vocab_size, embedding_dim, hidden_dim):
    k = jax.random.split(key, 6)
    scale = 0.1
    return {
        "embedding": scale * jax.random.normal(k[0], (vocab_size, embedding_dim), jnp.float32),
        "w_ih": scale * jax.random.normal(k[1], (embedding_dim, 4 * hidden_dim), jnp.float32),
        "w_hh": scale * jax.random.normal(k[2], (hidden_dim, 4 * hidden_dim), jnp.float32),
        "b": scale * jax.random.normal(k[3], (1, 4 * hidden_dim), jnp.float32),
        "w_fc": scale * jax.random.normal(k[4], (hidden_dim, vocab_size), jnp.float32),
        "b_fc": scale * jax.random.normal(k[5], (1, vocab_size), jnp.float32),
    }


if __name__ == "__main__":
    vocab_size = 50
    embedding_dim = 64
    hidden_dim = 128
    B, S = 2, 8

    key = jax.random.PRNGKey(0)
    pkey, xkey = jax.random.split(key)
    params = init_params(pkey, vocab_size, embedding_dim, hidden_dim)
    x_tokens = jax.random.randint(xkey, (B, S), 0, vocab_size, dtype=jnp.int32)

    out = simple_llm_forward(x_tokens, params)
    out = jax.block_until_ready(out)

    ref = reference_forward(x_tokens, params)
    assert out.shape == (B, vocab_size)
    np.testing.assert_allclose(np.asarray(out), np.asarray(ref), atol=1e-4, rtol=1e-4)

    print("KERNEL_OK")
</pallas_src>

<mosaic_0001>
module attributes {stable_mosaic.version = 11 : i64} {
  func.func @lstm_fc_kernel(%arg0: memref<64x64xf32, #tpu.memory_space<vmem>>, %arg1: memref<64x512xf32, #tpu.memory_space<vmem>>, %arg2: memref<128x512xf32, #tpu.memory_space<vmem>>, %arg3: memref<1x512xf32, #tpu.memory_space<vmem>>, %arg4: memref<128x128xf32, #tpu.memory_space<vmem>>, %arg5: memref<1x128xf32, #tpu.memory_space<vmem>>, %arg6: memref<8x128xf32, #tpu.memory_space<vmem>>, %arg7: memref<64x512xf32, #tpu.memory_space<vmem>>) attributes {dimension_semantics = [], scalar_prefetch = 0 : i64, scratch_operands = 1 : i64, tpu.core_type = #tpu.core_type<tc>} {
    %c0 = arith.constant 0 : index
    %c0_0 = arith.constant 0 : index
    %0 = vector.load %arg0[%c0, %c0_0] : memref<64x64xf32, #tpu.memory_space<vmem>>, vector<64x64xf32>
    %c0_1 = arith.constant 0 : index
    %c0_2 = arith.constant 0 : index
    %1 = vector.load %arg1[%c0_1, %c0_2] : memref<64x512xf32, #tpu.memory_space<vmem>>, vector<64x512xf32>
    %cst = arith.constant dense<0.000000e+00> : vector<64x512xf32>
    %2 = tpu.matmul %0, %1, %cst {dimension_numbers = #tpu.dot_dimension_numbers<[1], [0], [0], [1], [0, 0, 1, 1], [], []>} : vector<64x64xf32>, vector<64x512xf32>, vector<64x512xf32> -> vector<64x512xf32>
    %c0_3 = arith.constant 0 : index
    %c0_4 = arith.constant 0 : index
    %3 = vector.load %arg3[%c0_3, %c0_4] : memref<1x512xf32, #tpu.memory_space<vmem>>, vector<1x512xf32>
    %4 = vector.broadcast %3 : vector<1x512xf32> to vector<64x512xf32>
    %5 = arith.addf %2, %4 : vector<64x512xf32>
    %c0_5 = arith.constant 0 : index
    %c0_6 = arith.constant 0 : index
    %6 = vector.load %arg7[%c0_5, %c0_6] : memref<64x512xf32, #tpu.memory_space<vmem>>, vector<64x512xf32>
    tpu.vector_store %arg7[%c0_5, %c0_6], %5 {strides = array<i32>} : memref<64x512xf32, #tpu.memory_space<vmem>>, vector<64x512xf32>,
    %c0_7 = arith.constant 0 : index
    %c0_8 = arith.constant 0 : index
    %7 = vector.load %arg2[%c0_7, %c0_8] : memref<128x512xf32, #tpu.memory_space<vmem>>, vector<128x512xf32>
    %cst_9 = arith.constant 0.000000e+00 : f32
    %8 = vector.broadcast %cst_9 : f32 to vector<8x128xf32>
    %cst_10 = arith.constant 0.000000e+00 : f32
    %9 = vector.broadcast %cst_10 : f32 to vector<8x128xf32>
    %c0_i32 = arith.constant 0 : i32
    %c8_i32 = arith.constant 8 : i32
    %10 = arith.muli %c0_i32, %c8_i32 : i32
    %11 = tpu.assume_multiple %10, 8 : i32
    %12 = arith.index_cast %11 : i32 to index
    %c0_11 = arith.constant 0 : index
    %13 = vector.load %arg7[%12, %c0_11] : memref<64x512xf32, #tpu.memory_space<vmem>>, vector<8x512xf32>
    %cst_12 = arith.constant dense<0.000000e+00> : vector<8x512xf32>
    %14 = tpu.matmul %8, %7, %cst_12 {dimension_numbers = #tpu.dot_dimension_numbers<[1], [0], [0], [1], [0, 0, 1, 1], [], []>} : vector<8x128xf32>, vector<128x512xf32>, vector<8x512xf32> -> vector<8x512xf32>
    %15 = arith.addf %13, %14 : vector<8x512xf32>
    %16 = vector.extract_strided_slice %15 {offsets = [0, 0], sizes = [8, 128], strides = [1, 1]} : vector<8x512xf32> to vector<8x128xf32>
    %17 = arith.negf %16 : vector<8x128xf32>
    %18 = math.exp %17 : vector<8x128xf32>
    %cst_13 = arith.constant 1.000000e+00 : f32
    %19 = vector.broadcast %cst_13 : f32 to vector<8x128xf32>
    %20 = arith.addf %19, %18 : vector<8x128xf32>
    %21 = arith.divf %19, %20 : vector<8x128xf32>
    %22 = vector.extract_strided_slice %15 {offsets = [0, 128], sizes = [8, 128], strides = [1, 1]} : vector<8x512xf32> to vector<8x128xf32>
    %23 = arith.negf %22 : vector<8x128xf32>
    %24 = math.exp %23 : vector<8x128xf32>
    %cst_14 = arith.constant 1.000000e+00 : f32
    %25 = vector.broadcast %cst_14 : f32 to vector<8x128xf32>
    %26 = arith.addf %25, %24 : vector<8x128xf32>
    %27 = arith.divf %25, %26 : vector<8x128xf32>
    %28 = vector.extract_strided_slice %15 {offsets = [0, 256], sizes = [8, 128], strides = [1, 1]} : vector<8x512xf32> to vector<8x128xf32>
    %29 = math.tanh %28 : vector<8x128xf32>
    %30 = vector.extract_strided_slice %15 {offsets = [0, 384], sizes = [8, 128], strides = [1, 1]} : vector<8x512xf32> to vector<8x128xf32>
    %31 = arith.negf %30 : vector<8x128xf32>
    %32 = math.exp %31 : vector<8x128xf32>
    %cst_15 = arith.constant 1.000000e+00 : f32
    %33 = vector.broadcast %cst_15 : f32 to vector<8x128xf32>
    %34 = arith.addf %33, %32 : vector<8x128xf32>
    %35 = arith.divf %33, %34 : vector<8x128xf32>
    %36 = arith.mulf %27, %9 : vector<8x128xf32>
    %37 = arith.mulf %21, %29 : vector<8x128xf32>
    %38 = arith.addf %36, %37 : vector<8x128xf32>
    %39 = math.tanh %38 : vector<8x128xf32>
    %40 = arith.mulf %35, %39 : vector<8x128xf32>
    %c1_i32 = arith.constant 1 : i32
    %c8_i32_16 = arith.constant 8 : i32
    %41 = arith.muli %c1_i32, %c8_i32_16 : i32
    %42 = tpu.assume_multiple %41, 8 : i32
    %43 = arith.index_cast %42 : i32 to index
    %c0_17 = arith.constant 0 : index
    %44 = vector.load %arg7[%43, %c0_17] : memref<64x512xf32, #tpu.memory_space<vmem>>, vector<8x512xf32>
    %cst_18 = arith.constant dense<0.000000e+00> : vector<8x512xf32>
    %45 = tpu.matmul %40, %7, %cst_18 {dimension_numbers = #tpu.dot_dimension_numbers<[1], [0], [0], [1], [0, 0, 1, 1], [], []>} : vector<8x128xf32>, vector<128x512xf32>, vector<8x512xf32> -> vector<8x512xf32>
    %46 = arith.addf %44, %45 : vector<8x512xf32>
    %47 = vector.extract_strided_slice %46 {offsets = [0, 0], sizes = [8, 128], strides = [1, 1]} : vector<8x512xf32> to vector<8x128xf32>
    %48 = arith.negf %47 : vector<8x128xf32>
    %49 = math.exp %48 : vector<8x128xf32>
    %cst_19 = arith.constant 1.000000e+00 : f32
    %50 = vector.broadcast %cst_19 : f32 to vector<8x128xf32>
    %51 = arith.addf %50, %49 : vector<8x128xf32>
    %52 = arith.divf %50, %51 : vector<8x128xf32>
    %53 = vector.extract_strided_slice %46 {offsets = [0, 128], sizes = [8, 128], strides = [1, 1]} : vector<8x512xf32> to vector<8x128xf32>
    %54 = arith.negf %53 : vector<8x128xf32>
    %55 = math.exp %54 : vector<8x128xf32>
    %cst_20 = arith.constant 1.000000e+00 : f32
    %56 = vector.broadcast %cst_20 : f32 to vector<8x128xf32>
    %57 = arith.addf %56, %55 : vector<8x128xf32>
    %58 = arith.divf %56, %57 : vector<8x128xf32>
    %59 = vector.extract_strided_slice %46 {offsets = [0, 256], sizes = [8, 128], strides = [1, 1]} : vector<8x512xf32> to vector<8x128xf32>
    %60 = math.tanh %59 : vector<8x128xf32>
    %61 = vector.extract_strided_slice %46 {offsets = [0, 384], sizes = [8, 128], strides = [1, 1]} : vector<8x512xf32> to vector<8x128xf32>
    %62 = arith.negf %61 : vector<8x128xf32>
    %63 = math.exp %62 : vector<8x128xf32>
    %cst_21 = arith.constant 1.000000e+00 : f32
    %64 = vector.broadcast %cst_21 : f32 to vector<8x128xf32>
    %65 = arith.addf %64, %63 : vector<8x128xf32>
    %66 = arith.divf %64, %65 : vector<8x128xf32>
    %67 = arith.mulf %58, %38 : vector<8x128xf32>
    %68 = arith.mulf %52, %60 : vector<8x128xf32>
    %69 = arith.addf %67, %68 : vector<8x128xf32>
    %70 = math.tanh %69 : vector<8x128xf32>
    %71 = arith.mulf %66, %70 : vector<8x128xf32>
    %c2_i32 = arith.constant 2 : i32
    %c8_i32_22 = arith.constant 8 : i32
    %72 = arith.muli %c2_i32, %c8_i32_22 : i32
    %73 = tpu.assume_multiple %72, 8 : i32
    %74 = arith.index_cast %73 : i32 to index
    %c0_23 = arith.constant 0 : index
    %75 = vector.load %arg7[%74, %c0_23] : memref<64x512xf32, #tpu.memory_space<vmem>>, vector<8x512xf32>
    %cst_24 = arith.constant dense<0.000000e+00> : vector<8x512xf32>
    %76 = tpu.matmul %71, %7, %cst_24 {dimension_numbers = #tpu.dot_dimension_numbers<[1], [0], [0], [1], [0, 0, 1, 1], [], []>} : vector<8x128xf32>, vector<128x512xf32>, vector<8x512xf32> -> vector<8x512xf32>
    %77 = arith.addf %75, %76 : vector<8x512xf32>
    %78 = vector.extract_strided_slice %77 {offsets = [0, 0], sizes = [8, 128], strides = [1, 1]} : vector<8x512xf32> to vector<8x128xf32>
    %79 = arith.negf %78 : vector<8x128xf32>
    %80 = math.exp %79 : vector<8x128xf32>
    %cst_25 = arith.constant 1.000000e+00 : f32
    %81 = vector.broadcast %cst_25 : f32 to vector<8x128xf32>
    %82 = arith.addf %81, %80 : vector<8x128xf32>
    %83 = arith.divf %81, %82 : vector<8x128xf32>
    %84 = vector.extract_strided_slice %77 {offsets = [0, 128], sizes = [8, 128], strides = [1, 1]} : vector<8x512xf32> to vector<8x128xf32>
    %85 = arith.negf %84 : vector<8x128xf32>
    %86 = math.exp %85 : vector<8x128xf32>
    %cst_26 = arith.constant 1.000000e+00 : f32
    %87 = vector.broadcast %cst_26 : f32 to vector<8x128xf32>
    %88 = arith.addf %87, %86 : vector<8x128xf32>
    %89 = arith.divf %87, %88 : vector<8x128xf32>
    %90 = vector.extract_strided_slice %77 {offsets = [0, 256], sizes = [8, 128], strides = [1, 1]} : vector<8x512xf32> to vector<8x128xf32>
    %91 = math.tanh %90 : vector<8x128xf32>
    %92 = vector.extract_strided_slice %77 {offsets = [0, 384], sizes = [8, 128], strides = [1, 1]} : vector<8x512xf32> to vector<8x128xf32>
    %93 = arith.negf %92 : vector<8x128xf32>
    %94 = math.exp %93 : vector<8x128xf32>
    %cst_27 = arith.constant 1.000000e+00 : f32
    %95 = vector.broadcast %cst_27 : f32 to vector<8x128xf32>
    %96 = arith.addf %95, %94 : vector<8x128xf32>
    %97 = arith.divf %95, %96 : vector<8x128xf32>
    %98 = arith.mulf %89, %69 : vector<8x128xf32>
    %99 = arith.mulf %83, %91 : vector<8x128xf32>
    %100 = arith.addf %98, %99 : vector<8x128xf32>
    %101 = math.tanh %100 : vector<8x128xf32>
    %102 = arith.mulf %97, %101 : vector<8x128xf32>
    %c3_i32 = arith.constant 3 : i32
    %c8_i32_28 = arith.constant 8 : i32
    %103 = arith.muli %c3_i32, %c8_i32_28 : i32
    %104 = tpu.assume_multiple %103, 8 : i32
    %105 = arith.index_cast %104 : i32 to index
    %c0_29 = arith.constant 0 : index
    %106 = vector.load %arg7[%105, %c0_29] : memref<64x512xf32, #tpu.memory_space<vmem>>, vector<8x512xf32>
    %cst_30 = arith.constant dense<0.000000e+00> : vector<8x512xf32>
    %107 = tpu.matmul %102, %7, %cst_30 {dimension_numbers = #tpu.dot_dimension_numbers<[1], [0], [0], [1], [0, 0, 1, 1], [], []>} : vector<8x128xf32>, vector<128x512xf32>, vector<8x512xf32> -> vector<8x512xf32>
    %108 = arith.addf %106, %107 : vector<8x512xf32>
    %109 = vector.extract_strided_slice %108 {offsets = [0, 0], sizes = [8, 128], strides = [1, 1]} : vector<8x512xf32> to vector<8x128xf32>
    %110 = arith.negf %109 : vector<8x128xf32>
    %111 = math.exp %110 : vector<8x128xf32>
    %cst_31 = arith.constant 1.000000e+00 : f32
    %112 = vector.broadcast %cst_31 : f32 to vector<8x128xf32>
    %113 = arith.addf %112, %111 : vector<8x128xf32>
    %114 = arith.divf %112, %113 : vector<8x128xf32>
    %115 = vector.extract_strided_slice %108 {offsets = [0, 128], sizes = [8, 128], strides = [1, 1]} : vector<8x512xf32> to vector<8x128xf32>
    %116 = arith.negf %115 : vector<8x128xf32>
    %117 = math.exp %116 : vector<8x128xf32>
    %cst_32 = arith.constant 1.000000e+00 : f32
    %118 = vector.broadcast %cst_32 : f32 to vector<8x128xf32>
    %119 = arith.addf %118, %117 : vector<8x128xf32>
    %120 = arith.divf %118, %119 : vector<8x128xf32>
    %121 = vector.extract_strided_slice %108 {offsets = [0, 256], sizes = [8, 128], strides = [1, 1]} : vector<8x512xf32> to vector<8x128xf32>
    %122 = math.tanh %121 : vector<8x128xf32>
    %123 = vector.extract_strided_slice %108 {offsets = [0, 384], sizes = [8, 128], strides = [1, 1]} : vector<8x512xf32> to vector<8x128xf32>
    %124 = arith.negf %123 : vector<8x128xf32>
    %125 = math.exp %124 : vector<8x128xf32>
    %cst_33 = arith.constant 1.000000e+00 : f32
    %126 = vector.broadcast %cst_33 : f32 to vector<8x128xf32>
    %127 = arith.addf %126, %125 : vector<8x128xf32>
    %128 = arith.divf %126, %127 : vector<8x128xf32>
    %129 = arith.mulf %120, %100 : vector<8x128xf32>
    %130 = arith.mulf %114, %122 : vector<8x128xf32>
    %131 = arith.addf %129, %130 : vector<8x128xf32>
    %132 = math.tanh %131 : vector<8x128xf32>
    %133 = arith.mulf %128, %132 : vector<8x128xf32>
    %c4_i32 = arith.constant 4 : i32
    %c8_i32_34 = arith.constant 8 : i32
    %134 = arith.muli %c4_i32, %c8_i32_34 : i32
    %135 = tpu.assume_multiple %134, 8 : i32
    %136 = arith.index_cast %135 : i32 to index
    %c0_35 = arith.constant 0 : index
    %137 = vector.load %arg7[%136, %c0_35] : memref<64x512xf32, #tpu.memory_space<vmem>>, vector<8x512xf32>
    %cst_36 = arith.constant dense<0.000000e+00> : vector<8x512xf32>
    %138 = tpu.matmul %133, %7, %cst_36 {dimension_numbers = #tpu.dot_dimension_numbers<[1], [0], [0], [1], [0, 0, 1, 1], [], []>} : vector<8x128xf32>, vector<128x512xf32>, vector<8x512xf32> -> vector<8x512xf32>
    %139 = arith.addf %137, %138 : vector<8x512xf32>
    %140 = vector.extract_strided_slice %139 {offsets = [0, 0], sizes = [8, 128], strides = [1, 1]} : vector<8x512xf32> to vector<8x128xf32>
    %141 = arith.negf %140 : vector<8x128xf32>
    %142 = math.exp %141 : vector<8x128xf32>
    %cst_37 = arith.constant 1.000000e+00 : f32
    %143 = vector.broadcast %cst_37 : f32 to vector<8x128xf32>
    %144 = arith.addf %143, %142 : vector<8x128xf32>
    %145 = arith.divf %143, %144 : vector<8x128xf32>
    %146 = vector.extract_strided_slice %139 {offsets = [0, 128], sizes = [8, 128], strides = [1, 1]} : vector<8x512xf32> to vector<8x128xf32>
    %147 = arith.negf %146 : vector<8x128xf32>
    %148 = math.exp %147 : vector<8x128xf32>
    %cst_38 = arith.constant 1.000000e+00 : f32
    %149 = vector.broadcast %cst_38 : f32 to vector<8x128xf32>
    %150 = arith.addf %149, %148 : vector<8x128xf32>
    %151 = arith.divf %149, %150 : vector<8x128xf32>
    %152 = vector.extract_strided_slice %139 {offsets = [0, 256], sizes = [8, 128], strides = [1, 1]} : vector<8x512xf32> to vector<8x128xf32>
    %153 = math.tanh %152 : vector<8x128xf32>
    %154 = vector.extract_strided_slice %139 {offsets = [0, 384], sizes = [8, 128], strides = [1, 1]} : vector<8x512xf32> to vector<8x128xf32>
    %155 = arith.negf %154 : vector<8x128xf32>
    %156 = math.exp %155 : vector<8x128xf32>
    %cst_39 = arith.constant 1.000000e+00 : f32
    %157 = vector.broadcast %cst_39 : f32 to vector<8x128xf32>
    %158 = arith.addf %157, %156 : vector<8x128xf32>
    %159 = arith.divf %157, %158 : vector<8x128xf32>
    %160 = arith.mulf %151, %131 : vector<8x128xf32>
    %161 = arith.mulf %145, %153 : vector<8x128xf32>
    %162 = arith.addf %160, %161 : vector<8x128xf32>
    %163 = math.tanh %162 : vector<8x128xf32>
    %164 = arith.mulf %159, %163 : vector<8x128xf32>
    %c5_i32 = arith.constant 5 : i32
    %c8_i32_40 = arith.constant 8 : i32
    %165 = arith.muli %c5_i32, %c8_i32_40 : i32
    %166 = tpu.assume_multiple %165, 8 : i32
    %167 = arith.index_cast %166 : i32 to index
    %c0_41 = arith.constant 0 : index
    %168 = vector.load %arg7[%167, %c0_41] : memref<64x512xf32, #tpu.memory_space<vmem>>, vector<8x512xf32>
    %cst_42 = arith.constant dense<0.000000e+00> : vector<8x512xf32>
    %169 = tpu.matmul %164, %7, %cst_42 {dimension_numbers = #tpu.dot_dimension_numbers<[1], [0], [0], [1], [0, 0, 1, 1], [], []>} : vector<8x128xf32>, vector<128x512xf32>, vector<8x512xf32> -> vector<8x512xf32>
    %170 = arith.addf %168, %169 : vector<8x512xf32>
    %171 = vector.extract_strided_slice %170 {offsets = [0, 0], sizes = [8, 128], strides = [1, 1]} : vector<8x512xf32> to vector<8x128xf32>
    %172 = arith.negf %171 : vector<8x128xf32>
    %173 = math.exp %172 : vector<8x128xf32>
    %cst_43 = arith.constant 1.000000e+00 : f32
    %174 = vector.broadcast %cst_43 : f32 to vector<8x128xf32>
    %175 = arith.addf %174, %173 : vector<8x128xf32>
    %176 = arith.divf %174, %175 : vector<8x128xf32>
    %177 = vector.extract_strided_slice %170 {offsets = [0, 128], sizes = [8, 128], strides = [1, 1]} : vector<8x512xf32> to vector<8x128xf32>
    %178 = arith.negf %177 : vector<8x128xf32>
    %179 = math.exp %178 : vector<8x128xf32>
    %cst_44 = arith.constant 1.000000e+00 : f32
    %180 = vector.broadcast %cst_44 : f32 to vector<8x128xf32>
    %181 = arith.addf %180, %179 : vector<8x128xf32>
    %182 = arith.divf %180, %181 : vector<8x128xf32>
    %183 = vector.extract_strided_slice %170 {offsets = [0, 256], sizes = [8, 128], strides = [1, 1]} : vector<8x512xf32> to vector<8x128xf32>
    %184 = math.tanh %183 : vector<8x128xf32>
    %185 = vector.extract_strided_slice %170 {offsets = [0, 384], sizes = [8, 128], strides = [1, 1]} : vector<8x512xf32> to vector<8x128xf32>
    %186 = arith.negf %185 : vector<8x128xf32>
    %187 = math.exp %186 : vector<8x128xf32>
    %cst_45 = arith.constant 1.000000e+00 : f32
    %188 = vector.broadcast %cst_45 : f32 to vector<8x128xf32>
    %189 = arith.addf %188, %187 : vector<8x128xf32>
    %190 = arith.divf %188, %189 : vector<8x128xf32>
    %191 = arith.mulf %182, %162 : vector<8x128xf32>
    %192 = arith.mulf %176, %184 : vector<8x128xf32>
    %193 = arith.addf %191, %192 : vector<8x128xf32>
    %194 = math.tanh %193 : vector<8x128xf32>
    %195 = arith.mulf %190, %194 : vector<8x128xf32>
    %c6_i32 = arith.constant 6 : i32
    %c8_i32_46 = arith.constant 8 : i32
    %196 = arith.muli %c6_i32, %c8_i32_46 : i32
    %197 = tpu.assume_multiple %196, 8 : i32
    %198 = arith.index_cast %197 : i32 to index
    %c0_47 = arith.constant 0 : index
    %199 = vector.load %arg7[%198, %c0_47] : memref<64x512xf32, #tpu.memory_space<vmem>>, vector<8x512xf32>
    %cst_48 = arith.constant dense<0.000000e+00> : vector<8x512xf32>
    %200 = tpu.matmul %195, %7, %cst_48 {dimension_numbers = #tpu.dot_dimension_numbers<[1], [0], [0], [1], [0, 0, 1, 1], [], []>} : vector<8x128xf32>, vector<128x512xf32>, vector<8x512xf32> -> vector<8x512xf32>
    %201 = arith.addf %199, %200 : vector<8x512xf32>
    %202 = vector.extract_strided_slice %201 {offsets = [0, 0], sizes = [8, 128], strides = [1, 1]} : vector<8x512xf32> to vector<8x128xf32>
    %203 = arith.negf %202 : vector<8x128xf32>
    %204 = math.exp %203 : vector<8x128xf32>
    %cst_49 = arith.constant 1.000000e+00 : f32
    %205 = vector.broadcast %cst_49 : f32 to vector<8x128xf32>
    %206 = arith.addf %205, %204 : vector<8x128xf32>
    %207 = arith.divf %205, %206 : vector<8x128xf32>
    %208 = vector.extract_strided_slice %201 {offsets = [0, 128], sizes = [8, 128], strides = [1, 1]} : vector<8x512xf32> to vector<8x128xf32>
    %209 = arith.negf %208 : vector<8x128xf32>
    %210 = math.exp %209 : vector<8x128xf32>
    %cst_50 = arith.constant 1.000000e+00 : f32
    %211 = vector.broadcast %cst_50 : f32 to vector<8x128xf32>
    %212 = arith.addf %211, %210 : vector<8x128xf32>
    %213 = arith.divf %211, %212 : vector<8x128xf32>
    %214 = vector.extract_strided_slice %201 {offsets = [0, 256], sizes = [8, 128], strides = [1, 1]} : vector<8x512xf32> to vector<8x128xf32>
    %215 = math.tanh %214 : vector<8x128xf32>
    %216 = vector.extract_strided_slice %201 {offsets = [0, 384], sizes = [8, 128], strides = [1, 1]} : vector<8x512xf32> to vector<8x128xf32>
    %217 = arith.negf %216 : vector<8x128xf32>
    %218 = math.exp %217 : vector<8x128xf32>
    %cst_51 = arith.constant 1.000000e+00 : f32
    %219 = vector.broadcast %cst_51 : f32 to vector<8x128xf32>
    %220 = arith.addf %219, %218 : vector<8x128xf32>
    %221 = arith.divf %219, %220 : vector<8x128xf32>
    %222 = arith.mulf %213, %193 : vector<8x128xf32>
    %223 = arith.mulf %207, %215 : vector<8x128xf32>
    %224 = arith.addf %222, %223 : vector<8x128xf32>
    %225 = math.tanh %224 : vector<8x128xf32>
    %226 = arith.mulf %221, %225 : vector<8x128xf32>
    %c7_i32 = arith.constant 7 : i32
    %c8_i32_52 = arith.constant 8 : i32
    %227 = arith.muli %c7_i32, %c8_i32_52 : i32
    %228 = tpu.assume_multiple %227, 8 : i32
    %229 = arith.index_cast %228 : i32 to index
    %c0_53 = arith.constant 0 : index
    %230 = vector.load %arg7[%229, %c0_53] : memref<64x512xf32, #tpu.memory_space<vmem>>, vector<8x512xf32>
    %cst_54 = arith.constant dense<0.000000e+00> : vector<8x512xf32>
    %231 = tpu.matmul %226, %7, %cst_54 {dimension_numbers = #tpu.dot_dimension_numbers<[1], [0], [0], [1], [0, 0, 1, 1], [], []>} : vector<8x128xf32>, vector<128x512xf32>, vector<8x512xf32> -> vector<8x512xf32>
    %232 = arith.addf %230, %231 : vector<8x512xf32>
    %233 = vector.extract_strided_slice %232 {offsets = [0, 0], sizes = [8, 128], strides = [1, 1]} : vector<8x512xf32> to vector<8x128xf32>
    %234 = arith.negf %233 : vector<8x128xf32>
    %235 = math.exp %234 : vector<8x128xf32>
    %cst_55 = arith.constant 1.000000e+00 : f32
    %236 = vector.broadcast %cst_55 : f32 to vector<8x128xf32>
    %237 = arith.addf %236, %235 : vector<8x128xf32>
    %238 = arith.divf %236, %237 : vector<8x128xf32>
    %239 = vector.extract_strided_slice %232 {offsets = [0, 128], sizes = [8, 128], strides = [1, 1]} : vector<8x512xf32> to vector<8x128xf32>
    %240 = arith.negf %239 : vector<8x128xf32>
    %241 = math.exp %240 : vector<8x128xf32>
    %cst_56 = arith.constant 1.000000e+00 : f32
    %242 = vector.broadcast %cst_56 : f32 to vector<8x128xf32>
    %243 = arith.addf %242, %241 : vector<8x128xf32>
    %244 = arith.divf %242, %243 : vector<8x128xf32>
    %245 = vector.extract_strided_slice %232 {offsets = [0, 256], sizes = [8, 128], strides = [1, 1]} : vector<8x512xf32> to vector<8x128xf32>
    %246 = math.tanh %245 : vector<8x128xf32>
    %247 = vector.extract_strided_slice %232 {offsets = [0, 384], sizes = [8, 128], strides = [1, 1]} : vector<8x512xf32> to vector<8x128xf32>
    %248 = arith.negf %247 : vector<8x128xf32>
    %249 = math.exp %248 : vector<8x128xf32>
    %cst_57 = arith.constant 1.000000e+00 : f32
    %250 = vector.broadcast %cst_57 : f32 to vector<8x128xf32>
    %251 = arith.addf %250, %249 : vector<8x128xf32>
    %252 = arith.divf %250, %251 : vector<8x128xf32>
    %253 = arith.mulf %244, %224 : vector<8x128xf32>
    %254 = arith.mulf %238, %246 : vector<8x128xf32>
    %255 = arith.addf %253, %254 : vector<8x128xf32>
    %256 = math.tanh %255 : vector<8x128xf32>
    %257 = arith.mulf %252, %256 : vector<8x128xf32>
    %c8_i32_58 = arith.constant 8 : i32
    %c0_59 = arith.constant 0 : index
    %c0_60 = arith.constant 0 : index
    %258 = vector.load %arg4[%c0_59, %c0_60] : memref<128x128xf32, #tpu.memory_space<vmem>>, vector<128x128xf32>
    %cst_61 = arith.constant dense<0.000000e+00> : vector<8x128xf32>
    %259 = tpu.matmul %257, %258, %cst_61 {dimension_numbers = #tpu.dot_dimension_numbers<[1], [0], [0], [1], [0, 0, 1, 1], [], []>} : vector<8x128xf32>, vector<128x128xf32>, vector<8x128xf32> -> vector<8x128xf32>
    %c0_62 = arith.constant 0 : index
    %c0_63 = arith.constant 0 : index
    %260 = vector.load %arg5[%c0_62, %c0_63] : memref<1x128xf32, #tpu.memory_space<vmem>>, vector<1x128xf32>
    %261 = vector.broadcast %260 : vector<1x128xf32> to vector<8x128xf32>
    %262 = arith.addf %259, %261 : vector<8x128xf32>
    %c0_64 = arith.constant 0 : index
    %c0_65 = arith.constant 0 : index
    %263 = vector.load %arg6[%c0_64, %c0_65] : memref<8x128xf32, #tpu.memory_space<vmem>>, vector<8x128xf32>
    tpu.vector_store %arg6[%c0_64, %c0_65], %262 {strides = array<i32>} : memref<8x128xf32, #tpu.memory_space<vmem>>, vector<8x128xf32>,
    return
  }
}

</mosaic_0001>

<bundles_post_ra>
// kernel: simple_llm_forward.1
= control target key start
LH: loop header
LB: loop body
LE: loop exit
PB: predicated region body
PF: predicated region fallthrough
CT: control target
= control target key end

     0   :  { %11 = vsyncpa [#allocation4], 0  ;;  %s2280_s21 = smov [#allocation3]   ;;  %s3767_s0 = inlined_call_operand.vmem [shape: f32[64,64], index: 0, kind: input, shape index: {}]   ;;  %s3768_s1 = inlined_call_operand.hbm [shape: f32[64,512], index: 1, kind: input, shape index: {}]   ;;  %s3769_s2 = inlined_call_operand.vmem [shape: f32[128,512], index: 2, kind: input, shape index: {}]   ;;  %s3770_s3 = inlined_call_operand.vmem [shape: f32[1,512], index: 3, kind: input, shape index: {}]   ;;  %s3771_s4 = inlined_call_operand.vmem [shape: f32[128,128], index: 4, kind: input, shape index: {}]   ;;  %s3772_s5 = inlined_call_operand.vmem [shape: f32[1,128], index: 5, kind: input, shape index: {}]   ;;  %s3773_s6 = inlined_call_operand.vmem [shape: f32[8,128], index: 6, kind: output, shape index: {}]  }
   0x1   :  { %s19_s22 = sshll.u32 %s2280_s21, 4  ;;  %s20_s22 = int_to_ptr.vmem [resolvable:$true] %s19_s22 }
   0x2   :  { %s2266_s23 = scalar_lea.vmem %s20_s22, 4096  ;;  %p2271_p1 = scmp.lt.s32.totalorder %s20_s22, %s20_s22 }
   0x3   :  { %p2267_p0 = scmp.ne.s32.totalorder %s20_s22, %s2266_s23  ;;  %p2272_p2 = scmp.lt.s32.totalorder %s2266_s23, %s2266_s23 }
   0x5   :  { %p2273_p3 = por %p2272_p2, %p2271_p1 }
   0x7   :  { %p2274_p4 = pnand %p2273_p3, %p2267_p0 }
   0x9   :  { %2277 = shalt.err (!%p2274_p4)
}
   0xa   :  { %s2281_s24 = smov 512   ;;  %s2282_s25 = smov 32  }
   0xb   :  { %25 = dma.hbm_to_vmem [thread:$0]  %s3768_s1, 4096, %s20_s22, [#allocation4], %s2281_s24, %s2281_s24, %s2282_s25  }
   0xc   :  { %2278 = dma.done.wait [#allocation4], 4096  }
   0xd   :  { %2279 = vsyncadd [#allocation4], 4294963200  ;;  %v3774_v0 = vmov 0.0   ;;  %v74_v1 = vld [vmem:[#allocation3 + $0xe8] sm:$0xff]  ;;  %v76_v2 = vld [vmem:[#allocation3 + $0xf8] sm:$0xff]  ;;  %vm99_vm0 = vcmask 523264  }
   0xe   :  { %188 = vmatprep.mubr.f32.mxu0 %v3774_v0  ;;  %301 = vmatprep.mubr.f32.mxu1 %v3774_v0  ;;  %v73_v3 = vld [vmem:[#allocation3 + $0xe0] sm:$0xff]  ;;  %v75_v4 = vld [vmem:[#allocation3 + $0xf0] sm:$0xff]  ;;  %v70_v5 = vld [vmem:[#allocation3 + $0xc8] sm:$0xff]  ;;  %vm2284_vm1 = vmmov 0  }
   0xf   :  { %140 = vmatprep.subr.mxu0 %v74_v1  ;;  %253 = vmatprep.subr.mxu1 %v76_v2  ;;  %v72_v6 = vld [vmem:[#allocation3 + $0xd8] sm:$0xff]  ;;  %v69_v7 = vld [vmem:[#allocation3 + $0xc0] sm:$0xff]  ;;  %v71_v8 = vld [vmem:[#allocation3 + $0xd0] sm:$0xff] }
  0x10   :  { %141 = vmatpush1.msra.mxu0 %v73_v3  ;;  %254 = vmatpush1.msra.mxu1 %v75_v4  ;;  %v66_v9 = vld [vmem:[#allocation3 + $0xa8] sm:$0xff]  ;;  %v68_v10 = vld [vmem:[#allocation3 + $0xb8] sm:$0xff]  ;;  %v65_v11 = vld [vmem:[#allocation3 + $0xa0] sm:$0xff] }
  0x11   :  { %142 = vmatprep.subr.mxu0 %v70_v5  ;;  %255 = vmatprep.subr.mxu1 %v72_v6  ;;  %v67_v12 = vld [vmem:[#allocation3 + $0xb0] sm:$0xff]  ;;  %v62_v13 = vld [vmem:[#allocation3 + $0x88] sm:$0xff]  ;;  %v64_v14 = vld [vmem:[#allocation3 + $0x98] sm:$0xff] }
  0x12   :  { %143 = vmatpush1.msra.mxu0 %v69_v7  ;;  %256 = vmatpush1.msra.mxu1 %v71_v8  ;;  %v61_v15 = vld [vmem:[#allocation3 + $0x80] sm:$0xff]  ;;  %v63_v16 = vld [vmem:[#allocation3 + $0x90] sm:$0xff]  ;;  %v58_v17 = vld [vmem:[#allocation3 + $0x68] sm:$0xff] }
  0x13   :  { %144 = vmatprep.subr.mxu0 %v66_v9  ;;  %257 = vmatprep.subr.mxu1 %v68_v10  ;;  %v60_v18 = vld [vmem:[#allocation3 + $0x78] sm:$0xff]  ;;  %v57_v19 = vld [vmem:[#allocation3 + $0x60] sm:$0xff]  ;;  %v59_v20 = vld [vmem:[#allocation3 + $0x70] sm:$0xff] }
  0x14   :  { %145 = vmatpush1.msra.mxu0 %v65_v11  ;;  %258 = vmatpush1.msra.mxu1 %v67_v12  ;;  %v54_v21 = vld [vmem:[#allocation3 + $0x48] sm:$0xff]  ;;  %v56_v22 = vld [vmem:[#allocation3 + $0x58] sm:$0xff]  ;;  %v53_v23 = vld [vmem:[#allocation3 + $0x40] sm:$0xff] }
  0x15   :  { %146 = vmatprep.subr.mxu0 %v62_v13  ;;  %259 = vmatprep.subr.mxu1 %v64_v14  ;;  %v55_v24 = vld [vmem:[#allocation3 + $0x50] sm:$0xff]  ;;  %v50_v25 = vld [vmem:[#allocation3 + $0x28] sm:$0xff]  ;;  %v52_v26 = vld [vmem:[#allocation3 + $0x38] sm:$0xff] }
  0x16   :  { %147 = vmatpush1.msra.mxu0 %v61_v15  ;;  %260 = vmatpush1.msra.mxu1 %v63_v16  ;;  %v49_v27 = vld [vmem:[#allocation3 + $0x20] sm:$0xff]  ;;  %v51_v28 = vld [vmem:[#allocation3 + $0x30] sm:$0xff]  ;;  %v46_v29 = vld [vmem:[#allocation3 + $0x8] sm:$0xff] }
  0x17   :  { %148 = vmatprep.subr.mxu0 %v58_v17  ;;  %261 = vmatprep.subr.mxu1 %v60_v18  ;;  %v48_v30 = vld [vmem:[#allocation3 + $0x18] sm:$0xff]  ;;  %v45_v31 = vld [vmem:[#allocation3] sm:$0xff]  ;;  %v47_v32 = vld [vmem:[#allocation3 + $0x10] sm:$0xff] }
  0x18   :  { %149 = vmatpush1.msra.mxu0 %v57_v19  ;;  %262 = vmatpush1.msra.mxu1 %v59_v20  ;;  %v37_v33 = vld [vmem:[%s3767_s0] sm:$0xff]  ;;  %v2331_v34 = vld [vmem:[%s3769_s2 + $0x1e8] sm:$0xff]  ;;  %v2336_v35 = vld [vmem:[%s3769_s2 + $0x1f8] sm:$0xff] }
  0x19   :  { %150 = vmatprep.subr.mxu0 %v54_v21  ;;  %263 = vmatprep.subr.mxu1 %v56_v22  ;;  %3862 = vst [vmem:[#allocation6_spill] sm:$0xff] %v2331_v34  ;;  %3863 = vst [vmem:[#allocation7_spill] sm:$0xff] %v2336_v35  ;;  %v2341_v36 = vld [vmem:[%s3769_s2 + $0x1e0] sm:$0xff]  ;;  %v2346_v37 = vld [vmem:[%s3769_s2 + $0x1f0] sm:$0xff] }
  0x1a   :  { %151 = vmatpush1.msra.mxu0 %v53_v23  ;;  %264 = vmatpush1.msra.mxu1 %v55_v24  ;;  %v2353_v38 = vld [vmem:[%s3769_s2 + $0x1c8] sm:$0xff]  ;;  %v2358_v39 = vld [vmem:[%s3769_s2 + $0x1d8] sm:$0xff]  ;;  %v2367_v40 = vld [vmem:[%s3769_s2 + $0x1c0] sm:$0xff] }
  0x1b   :  { %152 = vmatprep.subr.mxu0 %v50_v25  ;;  %265 = vmatprep.subr.mxu1 %v52_v26  ;;  %v2372_v41 = vld [vmem:[%s3769_s2 + $0x1d0] sm:$0xff]  ;;  %v38_v42 = vld [vmem:[%s3767_s0 + $0x8] sm:$0xff]  ;;  %v2389_v44 = vld [vmem:[%s3769_s2 + $0x1b8] sm:$0xff] }
  0x1c   :  { %153 = vmatpush1.msra.mxu0 %v49_v27  ;;  %266 = vmatpush1.msra.mxu1 %v51_v28  ;;  %v2384_v43 = vld [vmem:[%s3769_s2 + $0x1a8] sm:$0xff]  ;;  %v2396_v45 = vld [vmem:[%s3769_s2 + $0x1a0] sm:$0xff]  ;;  %v2401_v46 = vld [vmem:[%s3769_s2 + $0x1b0] sm:$0xff] }
  0x1d   :  { %154 = vmatprep.subr.mxu0 %v46_v29  ;;  %267 = vmatprep.subr.mxu1 %v48_v30  ;;  %v2408_v47 = vld [vmem:[%s3769_s2 + $0x188] sm:$0xff]  ;;  %v2413_v48 = vld [vmem:[%s3769_s2 + $0x198] sm:$0xff]  ;;  %v2422_v49 = vld [vmem:[%s3769_s2 + $0x180] sm:$0xff] }
  0x1e   :  { %155 = vmatpush1.msra.mxu0 %v45_v31  ;;  %268 = vmatpush1.msra.mxu1 %v47_v32  ;;  %v2427_v50 = vld [vmem:[%s3769_s2 + $0x190] sm:$0xff]  ;;  %v2439_v52 = vld [vmem:[%s3769_s2 + $0x168] sm:$0xff]  ;;  %v2444_v53 = vld [vmem:[%s3769_s2 + $0x178] sm:$0xff] }
  0x1f   :  { %1968 = vmatmul.mubr.msk.f32.vlgmr.msra.gmra.mxu0 %vm99_vm0, %v37_v33  ;;  %1976 = vmatmul.mubr.msk.f32.vlgmr.msra.gmra.mxu1 %vm99_vm0, %v37_v33  ;;  %v39_v51 = vld [vmem:[%s3767_s0 + $0x10] sm:$0xff]  ;;  %v2451_v54 = vld [vmem:[%s3769_s2 + $0x160] sm:$0xff]  ;;  %v2463_v56 = vld [vmem:[%s3769_s2 + $0x148] sm:$0xff] }
  0x20   :  { %453 = vmatprep.subr.mxu0 %v2331_v34  ;;  %524 = vmatprep.subr.mxu1 %v2336_v35  ;;  %v2456_v55 = vld [vmem:[%s3769_s2 + $0x170] sm:$0xff]  ;;  %v2468_v57 = vld [vmem:[%s3769_s2 + $0x158] sm:$0xff]  ;;  %v2477_v58 = vld [vmem:[%s3769_s2 + $0x140] sm:$0xff] }
  0x21   :  { %454 = vmatpush1.msra.mxu0 %v2341_v36  ;;  %525 = vmatpush1.msra.mxu1 %v2346_v37  ;;  %v2482_v59 = vld [vmem:[%s3769_s2 + $0x150] sm:$0xff]  ;;  %v40_v60 = vld [vmem:[%s3767_s0 + $0x18] sm:$0xff]  ;;  %v2494_v61 = vld [vmem:[%s3769_s2 + $0x128] sm:$0xff] }
  0x22   :  { %455 = vmatprep.subr.mxu0 %v2353_v38  ;;  %526 = vmatprep.subr.mxu1 %v2358_v39  ;;  %v2499_v62 = vld [vmem:[%s3769_s2 + $0x138] sm:$0xff]  ;;  %v2506_v63 = vld [vmem:[%s3769_s2 + $0x120] sm:$0xff]  ;;  %v2511_v1 = vld [vmem:[%s3769_s2 + $0x130] sm:$0xff] }
  0x23   :  { %194 = vmatprep.mubr.f32.mxu0 %v3774_v0  ;;  %307 = vmatprep.mubr.f32.mxu1 %v3774_v0  ;;  %v2518_v2 = vld [vmem:[%s3769_s2 + $0x108] sm:$0xff]  ;;  %v2523_v3 = vld [vmem:[%s3769_s2 + $0x118] sm:$0xff]  ;;  %v2532_v4 = vld [vmem:[%s3769_s2 + $0x100] sm:$0xff] }
  0x24   :  { %456 = vmatpush1.msra.mxu0 %v2367_v40  ;;  %527 = vmatpush1.msra.mxu1 %v2372_v41  ;;  %v2537_v5 = vld [vmem:[%s3769_s2 + $0x110] sm:$0xff]  ;;  %v41_v6 = vld [vmem:[%s3767_s0 + $0x20] sm:$0xff]  ;;  %v2549_v7 = vld [vmem:[%s3769_s2 + $0xe8] sm:$0xff] }
  0x25   :  { %1969 = vmatmul.mubr.msk.f32.gmra.mxu0 %vm99_vm0, %v38_v42  ;;  %1977 = vmatmul.mubr.msk.f32.gmra.mxu1 %vm99_vm0, %v38_v42  ;;  %v2554_v8 = vld [vmem:[%s3769_s2 + $0xf8] sm:$0xff]  ;;  %v2561_v9 = vld [vmem:[%s3769_s2 + $0xe0] sm:$0xff]  ;;  %v2566_v10 = vld [vmem:[%s3769_s2 + $0xf0] sm:$0xff] }
  0x26   :  { %457 = vmatprep.subr.mxu0 %v2384_v43  ;;  %528 = vmatprep.subr.mxu1 %v2389_v44  ;;  %v2573_v11 = vld [vmem:[%s3769_s2 + $0xc8] sm:$0xff]  ;;  %v2578_v12 = vld [vmem:[%s3769_s2 + $0xd8] sm:$0xff]  ;;  %v2587_v13 = vld [vmem:[%s3769_s2 + $0xc0] sm:$0xff] }
  0x27   :  { %458 = vmatpush1.msra.mxu0 %v2396_v45  ;;  %529 = vmatpush1.msra.mxu1 %v2401_v46  ;;  %v2592_v14 = vld [vmem:[%s3769_s2 + $0xd0] sm:$0xff]  ;;  %v42_v15 = vld [vmem:[%s3767_s0 + $0x28] sm:$0xff]  ;;  %v2609_v17 = vld [vmem:[%s3769_s2 + $0xb8] sm:$0xff] }
  0x28   :  { %459 = vmatprep.subr.mxu0 %v2408_v47  ;;  %530 = vmatprep.subr.mxu1 %v2413_v48  ;;  %v2604_v16 = vld [vmem:[%s3769_s2 + $0xa8] sm:$0xff]  ;;  %v2616_v18 = vld [vmem:[%s3769_s2 + $0xa0] sm:$0xff]  ;;  %v2621_v19 = vld [vmem:[%s3769_s2 + $0xb0] sm:$0xff] }
  0x29   :  { %200 = vmatprep.mubr.f32.mxu0 %v3774_v0  ;;  %313 = vmatprep.mubr.f32.mxu1 %v3774_v0  ;;  %v2628_v20 = vld [vmem:[%s3769_s2 + $0x88] sm:$0xff]  ;;  %v2633_v21 = vld [vmem:[%s3769_s2 + $0x98] sm:$0xff]  ;;  %v2642_v22 = vld [vmem:[%s3769_s2 + $0x80] sm:$0xff] }
  0x2a   :  { %460 = vmatpush1.msra.mxu0 %v2422_v49  ;;  %531 = vmatpush1.msra.mxu1 %v2427_v50  ;;  %3864 = vst [vmem:[#allocation8_spill] sm:$0xff] %v2628_v20  ;;  %3865 = vst [vmem:[#allocation9_spill] sm:$0xff] %v2633_v21  ;;  %v2647_v23 = vld [vmem:[%s3769_s2 + $0x90] sm:$0xff]  ;;  %v2659_v25 = vld [vmem:[%s3769_s2 + $0x68] sm:$0xff] }
  0x2b   :  { %1970 = vmatmul.mubr.msk.f32.gmra.mxu0 %vm99_vm0, %v39_v51  ;;  %1978 = vmatmul.mubr.msk.f32.gmra.mxu1 %vm99_vm0, %v39_v51  ;;  %3866 = vst [vmem:[#allocation10_spill] sm:$0xff] %v2642_v22  ;;  %3867 = vst [vmem:[#allocation11_spill] sm:$0xff] %v2647_v23  ;;  %v43_v24 = vld [vmem:[%s3767_s0 + $0x30] sm:$0xff]  ;;  %v2664_v26 = vld [vmem:[%s3769_s2 + $0x78] sm:$0xff] }
  0x2c   :  { %461 = vmatprep.subr.mxu0 %v2439_v52  ;;  %532 = vmatprep.subr.mxu1 %v2444_v53  ;;  %3868 = vst [vmem:[#allocation12_spill] sm:$0xff] %v2659_v25  ;;  %3869 = vst [vmem:[#allocation13_spill] sm:$0xff] %v2664_v26  ;;  %v2671_v27 = vld [vmem:[%s3769_s2 + $0x60] sm:$0xff]  ;;  %v2676_v28 = vld [vmem:[%s3769_s2 + $0x70] sm:$0xff] }
  0x2d   :  { %462 = vmatpush1.msra.mxu0 %v2451_v54  ;;  %533 = vmatpush1.msra.mxu1 %v2456_v55  ;;  %3870 = vst [vmem:[#allocation14_spill] sm:$0xff] %v2671_v27  ;;  %3871 = vst [vmem:[#allocation15_spill] sm:$0xff] %v2676_v28  ;;  %v2683_v29 = vld [vmem:[%s3769_s2 + $0x48] sm:$0xff]  ;;  %v2688_v30 = vld [vmem:[%s3769_s2 + $0x58] sm:$0xff] }
  0x2e   :  { %463 = vmatprep.subr.mxu0 %v2463_v56  ;;  %534 = vmatprep.subr.mxu1 %v2468_v57  ;;  %3872 = vst [vmem:[#allocation16_spill] sm:$0xff] %v2683_v29  ;;  %3873 = vst [vmem:[#allocation17_spill] sm:$0xff] %v2688_v30  ;;  %v2697_v31 = vld [vmem:[%s3769_s2 + $0x40] sm:$0xff]  ;;  %v2702_v32 = vld [vmem:[%s3769_s2 + $0x50] sm:$0xff] }
  0x2f   :  { %206 = vmatprep.mubr.f32.mxu0 %v3774_v0  ;;  %319 = vmatprep.mubr.f32.mxu1 %v3774_v0  ;;  %3874 = vst [vmem:[#allocation18_spill] sm:$0xff] %v2697_v31  ;;  %3875 = vst [vmem:[#allocation19_spill] sm:$0xff] %v2702_v32  ;;  %v44_v33 = vld [vmem:[%s3767_s0 + $0x38] sm:$0xff]  ;;  %v2714_v42 = vld [vmem:[%s3769_s2 + $0x28] sm:$0xff] }
  0x30   :  { %464 = vmatpush1.msra.mxu0 %v2477_v58  ;;  %535 = vmatpush1.msra.mxu1 %v2482_v59  ;;  %3876 = vst [vmem:[#allocation20_spill] sm:$0xff] %v2714_v42  ;;  %v2719_v51 = vld [vmem:[%s3769_s2 + $0x38] sm:$0xff] }
  0x31   :  { %1971 = vmatmul.mubr.msk.f32.gmra.mxu0 %vm99_vm0, %v40_v60  ;;  %1979 = vmatmul.mubr.msk.f32.gmra.mxu1 %vm99_vm0, %v40_v60  ;;  %3877 = vst [vmem:[#allocation21_spill] sm:$0xff] %v2719_v51  ;;  %v2726_v60 = vld [vmem:[%s3769_s2 + $0x20] sm:$0xff] }
  0x32   :  { %465 = vmatprep.subr.mxu0 %v2494_v61  ;;  %536 = vmatprep.subr.mxu1 %v2499_v62  ;;  %3878 = vst [vmem:[#allocation22_spill] sm:$0xff] %v2726_v60 }
  0x33   :  { %466 = vmatpush1.msra.mxu0 %v2506_v63  ;;  %537 = vmatpush1.msra.mxu1 %v2511_v1 }
  0x34   :  { %467 = vmatprep.subr.mxu0 %v2518_v2  ;;  %538 = vmatprep.subr.mxu1 %v2523_v3 }
  0x35   :  { %212 = vmatprep.mubr.f32.mxu0 %v3774_v0  ;;  %325 = vmatprep.mubr.f32.mxu1 %v3774_v0 }
  0x36   :  { %468 = vmatpush1.msra.mxu0 %v2532_v4  ;;  %539 = vmatpush1.msra.mxu1 %v2537_v5 }
  0x37   :  { %1972 = vmatmul.mubr.msk.f32.gmra.mxu0 %vm99_vm0, %v41_v6  ;;  %1980 = vmatmul.mubr.msk.f32.gmra.mxu1 %vm99_vm0, %v41_v6  ;;  %v2731_v6 = vld [vmem:[%s3769_s2 + $0x30] sm:$0xff] }
  0x38   :  { %469 = vmatprep.subr.mxu0 %v2549_v7  ;;  %540 = vmatprep.subr.mxu1 %v2554_v8  ;;  %3879 = vst [vmem:[#allocation23_spill] sm:$0xff] %v2731_v6 }
  0x39   :  { %470 = vmatpush1.msra.mxu0 %v2561_v9  ;;  %541 = vmatpush1.msra.mxu1 %v2566_v10 }
  0x3a   :  { %471 = vmatprep.subr.mxu0 %v2573_v11  ;;  %542 = vmatprep.subr.mxu1 %v2578_v12 }
  0x3b   :  { %218 = vmatprep.mubr.f32.mxu0 %v3774_v0  ;;  %331 = vmatprep.mubr.f32.mxu1 %v3774_v0 }
  0x3c   :  { %472 = vmatpush1.msra.mxu0 %v2587_v13  ;;  %543 = vmatpush1.msra.mxu1 %v2592_v14 }
  0x3d   :  { %1973 = vmatmul.mubr.msk.f32.gmra.mxu0 %vm99_vm0, %v42_v15  ;;  %1981 = vmatmul.mubr.msk.f32.gmra.mxu1 %vm99_vm0, %v42_v15  ;;  %v2738_v15 = vld [vmem:[%s3769_s2 + $0x8] sm:$0xff] }
  0x3e   :  { %473 = vmatprep.subr.mxu0 %v2604_v16  ;;  %544 = vmatprep.subr.mxu1 %v2609_v17  ;;  %3880 = vst [vmem:[#allocation24_spill] sm:$0xff] %v2738_v15 }
  0x3f   :  { %474 = vmatpush1.msra.mxu0 %v2616_v18  ;;  %545 = vmatpush1.msra.mxu1 %v2621_v19 }
  0x40   :  { %475 = vmatprep.subr.mxu0 %v2628_v20  ;;  %546 = vmatprep.subr.mxu1 %v2633_v21 }
  0x41   :  { %224 = vmatprep.mubr.f32.mxu0 %v3774_v0  ;;  %337 = vmatprep.mubr.f32.mxu1 %v3774_v0 }
  0x42   :  { %476 = vmatpush1.msra.mxu0 %v2642_v22  ;;  %547 = vmatpush1.msra.mxu1 %v2647_v23 }
  0x43   :  { %1974 = vmatmul.mubr.msk.f32.gmra.mxu0 %vm99_vm0, %v43_v24  ;;  %1982 = vmatmul.mubr.msk.f32.gmra.mxu1 %vm99_vm0, %v43_v24  ;;  %v2743_v24 = vld [vmem:[%s3769_s2 + $0x18] sm:$0xff] }
  0x44   :  { %477 = vmatprep.subr.mxu0 %v2659_v25  ;;  %548 = vmatprep.subr.mxu1 %v2664_v26  ;;  %3881 = vst [vmem:[#allocation25_spill] sm:$0xff] %v2743_v24 }
  0x45   :  { %478 = vmatpush1.msra.mxu0 %v2671_v27  ;;  %549 = vmatpush1.msra.mxu1 %v2676_v28 }
  0x46   :  { %479 = vmatprep.subr.mxu0 %v2683_v29  ;;  %550 = vmatprep.subr.mxu1 %v2688_v30 }
  0x47   :  { %230 = vmatprep.mubr.f32.mxu0 %v3774_v0  ;;  %343 = vmatprep.mubr.f32.mxu1 %v3774_v0  ;;  %v2750_v0 = vld [vmem:[%s3769_s2] sm:$0xff] }
  0x48   :  { %480 = vmatpush1.msra.mxu0 %v2697_v31  ;;  %551 = vmatpush1.msra.mxu1 %v2702_v32  ;;  %3882 = vst [vmem:[#allocation26_spill] sm:$0xff] %v2750_v0 }
  0x49   :  { %1975 = vmatmul.mubr.msk.f32.gmra.mxu0 %vm99_vm0, %v44_v33  ;;  %1983 = vmatmul.mubr.msk.f32.gmra.mxu1 %vm99_vm0, %v44_v33  ;;  %v2757_v33 = vld [vmem:[%s3769_s2 + $0x10] sm:$0xff] }
  0x4a   :  { %481 = vmatprep.subr.mxu0 %v2714_v42  ;;  %552 = vmatprep.subr.mxu1 %v2719_v51  ;;  %3883 = vst [vmem:[#allocation27_spill] sm:$0xff] %v2757_v33  ;;  %v3884_v51 = vmov 0.0  }
  0x4b   :  { %482 = vmatpush1.msra.mxu0 %v2726_v60  ;;  %553 = vmatpush1.msra.mxu1 %v2731_v6 }
  0x4c   :  { %483 = vmatprep.subr.mxu0 %v2738_v15  ;;  %554 = vmatprep.subr.mxu1 %v2743_v24 }
  0x4d   :  { %484 = vmatpush1.msra.mxu0 %v2750_v0  ;;  %517 = vmatprep.mubr.f32.mxu0 %v3884_v51 }
  0x4e   :  { %555 = vmatpush1.msra.mxu1 %v2757_v33  ;;  %588 = vmatprep.mubr.f32.mxu1 %v3884_v51 }
  0x4f   :  { %518 = vmatmul.mubr.f32.vlgmr.msra.gmra.mxu0 %v3884_v51  ;;  %589 = vmatmul.mubr.f32.vlgmr.msra.gmra.mxu1 %v3884_v51 }
  0x50   :  { %630 = vmatprep.subr.mxu0 %v2331_v34  ;;  %701 = vmatprep.subr.mxu1 %v2336_v35 }
  0x51   :  { %631 = vmatpush1.msra.mxu0 %v2341_v36  ;;  %702 = vmatpush1.msra.mxu1 %v2346_v37 }
  0x52   :  { %632 = vmatprep.subr.mxu0 %v2353_v38  ;;  %703 = vmatprep.subr.mxu1 %v2358_v39 }
  0x53   :  { %633 = vmatpush1.msra.mxu0 %v2367_v40  ;;  %704 = vmatpush1.msra.mxu1 %v2372_v41 }
  0x54   :  { %634 = vmatprep.subr.mxu0 %v2384_v43  ;;  %705 = vmatprep.subr.mxu1 %v2389_v44 }
  0x55   :  { %635 = vmatpush1.msra.mxu0 %v2396_v45  ;;  %706 = vmatpush1.msra.mxu1 %v2401_v46 }
  0x56   :  { %636 = vmatprep.subr.mxu0 %v2408_v47  ;;  %707 = vmatprep.subr.mxu1 %v2413_v48 }
  0x57   :  { %637 = vmatpush1.msra.mxu0 %v2422_v49  ;;  %708 = vmatpush1.msra.mxu1 %v2427_v50 }
  0x58   :  { %638 = vmatprep.subr.mxu0 %v2439_v52  ;;  %709 = vmatprep.subr.mxu1 %v2444_v53 }
  0x59   :  { %639 = vmatpush1.msra.mxu0 %v2451_v54  ;;  %710 = vmatpush1.msra.mxu1 %v2456_v55 }
  0x5a   :  { %640 = vmatprep.subr.mxu0 %v2463_v56  ;;  %711 = vmatprep.subr.mxu1 %v2468_v57 }
  0x5b   :  { %641 = vmatpush1.msra.mxu0 %v2477_v58  ;;  %712 = vmatpush1.msra.mxu1 %v2482_v59 }
  0x5c   :  { %642 = vmatprep.subr.mxu0 %v2494_v61  ;;  %713 = vmatprep.subr.mxu1 %v2499_v62 }
  0x5d   :  { %643 = vmatpush1.msra.mxu0 %v2506_v63  ;;  %714 = vmatpush1.msra.mxu1 %v2511_v1 }
  0x5e   :  { %644 = vmatprep.subr.mxu0 %v2518_v2  ;;  %715 = vmatprep.subr.mxu1 %v2523_v3 }
  0x5f   :  { %645 = vmatpush1.msra.mxu0 %v2532_v4  ;;  %716 = vmatpush1.msra.mxu1 %v2537_v5 }
  0x60   :  { %646 = vmatprep.subr.mxu0 %v2549_v7  ;;  %717 = vmatprep.subr.mxu1 %v2554_v8 }
  0x61   :  { %647 = vmatpush1.msra.mxu0 %v2561_v9  ;;  %718 = vmatpush1.msra.mxu1 %v2566_v10 }
  0x62   :  { %648 = vmatprep.subr.mxu0 %v2573_v11  ;;  %719 = vmatprep.subr.mxu1 %v2578_v12 }
  0x63   :  { %649 = vmatpush1.msra.mxu0 %v2587_v13  ;;  %720 = vmatpush1.msra.mxu1 %v2592_v14 }
  0x64   :  { %650 = vmatprep.subr.mxu0 %v2604_v16  ;;  %721 = vmatprep.subr.mxu1 %v2609_v17 }
  0x65   :  { %651 = vmatpush1.msra.mxu0 %v2616_v18  ;;  %722 = vmatpush1.msra.mxu1 %v2621_v19 }
  0x66   :  { %652 = vmatprep.subr.mxu0 %v2628_v20  ;;  %723 = vmatprep.subr.mxu1 %v2633_v21 }
  0x67   :  { %653 = vmatpush1.msra.mxu0 %v2642_v22  ;;  %724 = vmatpush1.msra.mxu1 %v2647_v23  ;;  %v3885_v22 = vld [vmem:[#allocation21_spill] sm:$0xff] }
  0x68   :  { %654 = vmatprep.subr.mxu0 %v2659_v25  ;;  %725 = vmatprep.subr.mxu1 %v2664_v26 }
  0x69   :  { %655 = vmatpush1.msra.mxu0 %v2671_v27  ;;  %726 = vmatpush1.msra.mxu1 %v2676_v28 }
  0x6a   :  { %656 = vmatprep.subr.mxu0 %v2683_v29  ;;  %727 = vmatprep.subr.mxu1 %v2688_v30 }
  0x6b   :  { %657 = vmatpush1.msra.mxu0 %v2697_v31  ;;  %728 = vmatpush1.msra.mxu1 %v2702_v32 }
  0x6c   :  { %658 = vmatprep.subr.mxu0 %v2714_v42  ;;  %729 = vmatprep.subr.mxu1 %v3885_v22  ;;  %v79_v22 = vlaneseq }
  0x6d   :  { %659 = vmatpush1.msra.mxu0 %v2726_v60  ;;  %730 = vmatpush1.msra.mxu1 %v2731_v6 }
  0x6e   :  { %660 = vmatprep.subr.mxu0 %v2738_v15  ;;  %731 = vmatprep.subr.mxu1 %v2743_v24  ;;  %v80_v60 = vshrl.u32 %v79_v22, 7 }
  0x6f   :  { %661 = vmatpush1.msra.mxu0 %v2750_v0  ;;  %694 = vmatprep.mubr.f32.mxu0 %v3884_v51  ;;  %v77_v0 = vld [vmem:[%s3770_s3] sm:$0xf] }
  0x70   :  { %732 = vmatpush1.msra.mxu1 %v2757_v33  ;;  %765 = vmatprep.mubr.f32.mxu1 %v3884_v51  ;;  %v81_v15 = vsub.s32 0, %v80_v60  ;;  %v89_v24 = vsub.s32 2, %v80_v60  ;;  %v85_v51 = vsub.s32 1, %v80_v60 }
  0x71   :  { %807 = vmatprep.subr.mxu0 %v2331_v34  ;;  %878 = vmatprep.subr.mxu1 %v2336_v35  ;;  %v93_v34 = vsub.s32 3, %v80_v60 }
  0x72   :  { %v82_v31 = vrot.slane %v77_v0, %v81_v15  ;;  %v2846_v35 = vrot.slane %v77_v0, %v89_v24  ;;  %v86_v29 = vrot.slane %v77_v0, %v85_v51 }
  0x73   :  { %v2848_v28 = vrot.slane %v77_v0, %v93_v34 }
  0xdf   :  { %v2835_v42 = vpop.f32.mrf.mxu0  ;;  %v2837_v6 = vpop.f32.mrf.mxu1 }
  0xe1   :  { %v2842_v32 = vpop.f32.mrf.mxu0  ;;  %v2844_v33 = vpop.f32.mrf.mxu1 }
  0xe5   :  { %v196_v22 = vpop.f32.mrf.mxu0  ;;  %v309_v30 = vpop.f32.mrf.mxu1 }
  0xe6   :  { %v2850_v27 = vadd.f32 %v196_v22, %v82_v31  ;;  %v2853_v26 = vadd.f32 %v309_v30, %v2846_v35 }
  0xe7   :  { %v198_v25 = vpop.f32.mrf.mxu0  ;;  %v311_v23 = vpop.f32.mrf.mxu1 }
  0xe8   :  { %3886 = vst [vmem:[#allocation28_spill] sm:$0xff] %v2850_v27  ;;  %3887 = vst [vmem:[#allocation29_spill] sm:$0xff] %v2853_v26  ;;  %v2855_v21 = vadd.f32 %v198_v25, %v86_v29  ;;  %v2858_v20 = vadd.f32 %v311_v23, %v2848_v28 }
  0xea   :  { %3888 = vst [vmem:[#allocation30_spill] sm:$0xff] %v2855_v21  ;;  %3889 = vst [vmem:[#allocation31_spill] sm:$0xff] %v2858_v20 }
  0xeb   :  { %v202_v60 = vpop.f32.mrf.mxu0  ;;  %v315_v15 = vpop.f32.mrf.mxu1 }
  0xec   :  { %v2860_v24 = vadd.f32 %v202_v60, %v82_v31  ;;  %v2863_v51 = vadd.f32 %v315_v15, %v2846_v35 }
  0xed   :  { %v204_v0 = vpop.f32.mrf.mxu0  ;;  %v317_v34 = vpop.f32.mrf.mxu1 }
  0xee   :  { %3890 = vst [vmem:[#allocation32_spill] sm:$0xff] %v2860_v24  ;;  %3891 = vst [vmem:[#allocation33_spill] sm:$0xff] %v2863_v51  ;;  %v2865_v22 = vadd.f32 %v204_v0, %v86_v29  ;;  %v2868_v30 = vadd.f32 %v317_v34, %v2848_v28 }
  0xf0   :  { %3892 = vst [vmem:[#allocation34_spill] sm:$0xff] %v2865_v22  ;;  %3893 = vst [vmem:[#allocation35_spill] sm:$0xff] %v2868_v30 }
  0xf1   :  { %v208_v26 = vpop.f32.mrf.mxu0  ;;  %v321_v25 = vpop.f32.mrf.mxu1 }
  0xf2   :  { %v2870_v21 = vadd.f32 %v208_v26, %v82_v31  ;;  %v2873_v23 = vadd.f32 %v321_v25, %v2846_v35 }
  0xf3   :  { %v210_v20 = vpop.f32.mrf.mxu0  ;;  %v323_v60 = vpop.f32.mrf.mxu1 }
  0xf4   :  { %3894 = vst [vmem:[#allocation36_spill] sm:$0xff] %v2870_v21  ;;  %3895 = vst [vmem:[#allocation37_spill] sm:$0xff] %v2873_v23  ;;  %v2875_v24 = vadd.f32 %v210_v20, %v86_v29  ;;  %v2878_v15 = vadd.f32 %v323_v60, %v2848_v28 }
  0xf6   :  { %3896 = vst [vmem:[#allocation38_spill] sm:$0xff] %v2875_v24  ;;  %3897 = vst [vmem:[#allocation39_spill] sm:$0xff] %v2878_v15 }
  0xf7   :  { %v214_v51 = vpop.f32.mrf.mxu0  ;;  %v327_v0 = vpop.f32.mrf.mxu1 }
  0xf8   :  { %v2880_v22 = vadd.f32 %v214_v51, %v82_v31  ;;  %v2883_v34 = vadd.f32 %v327_v0, %v2846_v35 }
  0xf9   :  { %v216_v30 = vpop.f32.mrf.mxu0  ;;  %v329_v26 = vpop.f32.mrf.mxu1 }
  0xfa   :  { %3898 = vst [vmem:[#allocation40_spill] sm:$0xff] %v2880_v22  ;;  %3899 = vst [vmem:[#allocation41_spill] sm:$0xff] %v2883_v34  ;;  %v2885_v21 = vadd.f32 %v216_v30, %v86_v29  ;;  %v2888_v25 = vadd.f32 %v329_v26, %v2848_v28 }
  0xfc   :  { %3900 = vst [vmem:[#allocation42_spill] sm:$0xff] %v2885_v21  ;;  %3901 = vst [vmem:[#allocation43_spill] sm:$0xff] %v2888_v25 }
  0xfd   :  { %v220_v23 = vpop.f32.mrf.mxu0  ;;  %v333_v20 = vpop.f32.mrf.mxu1 }
  0xfe   :  { %v2890_v24 = vadd.f32 %v220_v23, %v82_v31  ;;  %v2893_v60 = vadd.f32 %v333_v20, %v2846_v35 }
  0xff   :  { %v222_v15 = vpop.f32.mrf.mxu0  ;;  %v335_v51 = vpop.f32.mrf.mxu1 }
 0x100   :  { %3902 = vst [vmem:[#allocation44_spill] sm:$0xff] %v2890_v24  ;;  %3903 = vst [vmem:[#allocation45_spill] sm:$0xff] %v2893_v60  ;;  %v2895_v22 = vadd.f32 %v222_v15, %v86_v29  ;;  %v2898_v0 = vadd.f32 %v335_v51, %v2848_v28 }
 0x102   :  { %3904 = vst [vmem:[#allocation46_spill] sm:$0xff] %v2895_v22  ;;  %3905 = vst [vmem:[#allocation47_spill] sm:$0xff] %v2898_v0 }
 0x103   :  { %v226_v34 = vpop.f32.mrf.mxu0  ;;  %v339_v30 = vpop.f32.mrf.mxu1 }
 0x104   :  { %v2900_v21 = vadd.f32 %v226_v34, %v82_v31  ;;  %v2903_v26 = vadd.f32 %v339_v30, %v2846_v35 }
 0x105   :  { %v228_v25 = vpop.f32.mrf.mxu0  ;;  %v341_v23 = vpop.f32.mrf.mxu1 }
 0x106   :  { %3906 = vst [vmem:[#allocation48_spill] sm:$0xff] %v2900_v21  ;;  %3907 = vst [vmem:[#allocation49_spill] sm:$0xff] %v2903_v26  ;;  %v2905_v24 = vadd.f32 %v228_v25, %v86_v29  ;;  %v2908_v20 = vadd.f32 %v341_v23, %v2848_v28  ;;  %v191_v25 = vadd.f32 %v2835_v42, %v82_v31 }
 0x107   :  { %v193_v23 = vadd.f32 %v2842_v32, %v86_v29 }
 0x108   :  { %3908 = vst [vmem:[#allocation50_spill] sm:$0xff] %v2905_v24  ;;  %3909 = vst [vmem:[#allocation51_spill] sm:$0xff] %v2908_v20 }
 0x109   :  { %v232_v60 = vpop.f32.mrf.mxu0  ;;  %v345_v15 = vpop.f32.mrf.mxu1 }
 0x10a   :  { %v2910_v22 = vadd.f32 %v232_v60, %v82_v31  ;;  %v2913_v51 = vadd.f32 %v345_v15, %v2846_v35 }
 0x10b   :  { %v234_v0 = vpop.f32.mrf.mxu0  ;;  %v347_v34 = vpop.f32.mrf.mxu1 }
 0x10c   :  { %3910 = vst [vmem:[#allocation52_spill] sm:$0xff] %v2910_v22  ;;  %3911 = vst [vmem:[#allocation53_spill] sm:$0xff] %v2913_v51  ;;  %v2915_v21 = vadd.f32 %v234_v0, %v86_v29  ;;  %v2918_v30 = vadd.f32 %v347_v34, %v2848_v28  ;;  %v306_v0 = vadd.f32 %v2844_v33, %v2848_v28 }
 0x10d   :  { %v304_v34 = vadd.f32 %v2837_v6, %v2846_v35 }
 0x10e   :  { %3912 = vst [vmem:[#allocation54_spill] sm:$0xff] %v2915_v21  ;;  %3913 = vst [vmem:[#allocation55_spill] sm:$0xff] %v2918_v30 }
 0x10f   :  { %v519_v26 = vpop.f32.mrf.mxu0  ;;  %v590_v22 = vpop.f32.mrf.mxu1 }
 0x110   :  { %v595_v20 = vadd.f32 %v519_v26, %v191_v25  ;;  %v597_v30 = vadd.f32 %v590_v22, %v304_v34  ;;  %v3914_v22 = vld [vmem:[#allocation8_spill] sm:$0xff]  ;;  %v3919_v34 = vld [vmem:[#allocation13_spill] sm:$0xff] }
 0x111   :  { %v521_v24 = vpop.f32.mrf.mxu0  ;;  %v592_v51 = vpop.f32.mrf.mxu1 }
 0x112   :  { %v1984_v27 = vmul.f32 -1.442695, %v595_v20  ;;  %v596_v60 = vadd.f32 %v521_v24, %v193_v23  ;;  %v598_v21 = vadd.f32 %v592_v51, %v306_v0  ;;  %v3918_v0 = vld [vmem:[#allocation12_spill] sm:$0xff] }
 0x114   :  { %2066 = vpow2.f32 %v1984_v27  ;;  %v1985_v15 = vmul.f32 -1.442695, %v596_v60  ;;  %v1986_v31 = vmul.f32 -1.442695, %v598_v21  ;;  %v3916_v60 = vld [vmem:[#allocation10_spill] sm:$0xff] }
 0x116   :  { %2068 = vpow2.f32 %v1985_v15  ;;  %v3917_v15 = vld [vmem:[#allocation11_spill] sm:$0xff] }
 0x117   :  { %2070 = vpow2.f32 %v1986_v31  ;;  %v3920_v31 = vld [vmem:[#allocation14_spill] sm:$0xff] }
 0x121   :  { %v2067_v42 = vpop.eup %2066 }
 0x122   :  { %v602_v29 = vadd.f32 1.0, %v2067_v42  ;;  %v3921_v42 = vld [vmem:[#allocation15_spill] sm:$0xff] }
 0x123   :  { %v2069_v32 = vpop.eup %2068 }
 0x124   :  { %2072 = vrcp.f32 %v602_v29  ;;  %v608_v24 = vadd.f32 1.0, %v2069_v32  ;;  %v2071_v27 = vpop.eup %2070  ;;  %v3922_v29 = vld [vmem:[#allocation16_spill] sm:$0xff]  ;;  %v3923_v32 = vld [vmem:[#allocation17_spill] sm:$0xff] }
 0x125   :  { %2074 = vtanh.f32 %v597_v30  ;;  %v615_v23 = vadd.f32 1.0, %v2071_v27  ;;  %v3915_v30 = vld [vmem:[#allocation9_spill] sm:$0xff]  ;;  %v3925_v27 = vld [vmem:[#allocation19_spill] sm:$0xff] }
 0x126   :  { %2076 = vrcp.f32 %v608_v24  ;;  %v3924_v24 = vld [vmem:[#allocation18_spill] sm:$0xff] }
 0x127   :  { %2078 = vrcp.f32 %v615_v23  ;;  %v3929_v23 = vld [vmem:[#allocation23_spill] sm:$0xff] }
 0x131   :  { %v2073_v26 = vpop.eup %2072 }
 0x132   :  { %v2075_v20 = vpop.eup %2074 }
 0x133   :  { %v2077_v25 = vpop.eup %2076  ;;  %v619_v33 = vmul.f32 %v2075_v20, %v2073_v26  ;;  %v3926_v26 = vld [vmem:[#allocation20_spill] sm:$0xff]  ;;  %v3927_v20 = vld [vmem:[#allocation21_spill] sm:$0xff] }
 0x134   :  { %v618_v28 = vmul.f32 0.0, %v2077_v25  ;;  %v2079_v35 = vpop.eup %2078  ;;  %v3928_v25 = vld [vmem:[#allocation22_spill] sm:$0xff] }
 0x136   :  { %v2926_v51 = vadd.f32 %v619_v33, %v618_v28  ;;  %v3930_v28 = vld [vmem:[#allocation24_spill] sm:$0xff]  ;;  %v3931_v33 = vld [vmem:[#allocation25_spill] sm:$0xff] }
 0x138   :  { %2080 = vtanh.f32 %v2926_v51 }
 0x145   :  { %v2081_v21 = vpop.eup %2080 }
 0x146   :  { %v622_v6 = vmul.f32 %v2081_v21, %v2079_v35  ;;  %v3932_v35 = vld [vmem:[#allocation26_spill] sm:$0xff]  ;;  %v3933_v21 = vmov 0.0  }
 0x148   :  { %695 = vmatmul.mubr.f32.vlgmr.msra.gmra.mxu0 %v622_v6  ;;  %766 = vmatmul.mubr.f32.vlgmr.msra.gmra.mxu1 %v622_v6  ;;  %v3934_v6 = vld [vmem:[#allocation27_spill] sm:$0xff] }
 0x149   :  { %808 = vmatpush1.msra.mxu0 %v2341_v36  ;;  %879 = vmatpush1.msra.mxu1 %v2346_v37 }
 0x14a   :  { %809 = vmatprep.subr.mxu0 %v2353_v38  ;;  %880 = vmatprep.subr.mxu1 %v2358_v39 }
 0x14b   :  { %810 = vmatpush1.msra.mxu0 %v2367_v40  ;;  %881 = vmatpush1.msra.mxu1 %v2372_v41 }
 0x14c   :  { %811 = vmatprep.subr.mxu0 %v2384_v43  ;;  %882 = vmatprep.subr.mxu1 %v2389_v44 }
 0x14d   :  { %812 = vmatpush1.msra.mxu0 %v2396_v45  ;;  %883 = vmatpush1.msra.mxu1 %v2401_v46 }
 0x14e   :  { %813 = vmatprep.subr.mxu0 %v2408_v47  ;;  %884 = vmatprep.subr.mxu1 %v2413_v48 }
 0x14f   :  { %814 = vmatpush1.msra.mxu0 %v2422_v49  ;;  %885 = vmatpush1.msra.mxu1 %v2427_v50 }
 0x150   :  { %815 = vmatprep.subr.mxu0 %v2439_v52  ;;  %886 = vmatprep.subr.mxu1 %v2444_v53 }
 0x151   :  { %816 = vmatpush1.msra.mxu0 %v2451_v54  ;;  %887 = vmatpush1.msra.mxu1 %v2456_v55 }
 0x152   :  { %817 = vmatprep.subr.mxu0 %v2463_v56  ;;  %888 = vmatprep.subr.mxu1 %v2468_v57 }
 0x153   :  { %818 = vmatpush1.msra.mxu0 %v2477_v58  ;;  %889 = vmatpush1.msra.mxu1 %v2482_v59 }
 0x154   :  { %819 = vmatprep.subr.mxu0 %v2494_v61  ;;  %890 = vmatprep.subr.mxu1 %v2499_v62 }
 0x155   :  { %820 = vmatpush1.msra.mxu0 %v2506_v63  ;;  %891 = vmatpush1.msra.mxu1 %v2511_v1 }
 0x156   :  { %821 = vmatprep.subr.mxu0 %v2518_v2  ;;  %892 = vmatprep.subr.mxu1 %v2523_v3 }
 0x157   :  { %822 = vmatpush1.msra.mxu0 %v2532_v4  ;;  %893 = vmatpush1.msra.mxu1 %v2537_v5 }
 0x158   :  { %823 = vmatprep.subr.mxu0 %v2549_v7  ;;  %894 = vmatprep.subr.mxu1 %v2554_v8 }
 0x159   :  { %824 = vmatpush1.msra.mxu0 %v2561_v9  ;;  %895 = vmatpush1.msra.mxu1 %v2566_v10 }
 0x15a   :  { %825 = vmatprep.subr.mxu0 %v2573_v11  ;;  %896 = vmatprep.subr.mxu1 %v2578_v12 }
 0x15b   :  { %826 = vmatpush1.msra.mxu0 %v2587_v13  ;;  %897 = vmatpush1.msra.mxu1 %v2592_v14 }
 0x15c   :  { %827 = vmatprep.subr.mxu0 %v2604_v16  ;;  %898 = vmatprep.subr.mxu1 %v2609_v17 }
 0x15d   :  { %828 = vmatpush1.msra.mxu0 %v2616_v18  ;;  %899 = vmatpush1.msra.mxu1 %v2621_v19 }
 0x15e   :  { %829 = vmatprep.subr.mxu0 %v3914_v22  ;;  %900 = vmatprep.subr.mxu1 %v3915_v30 }
 0x15f   :  { %830 = vmatpush1.msra.mxu0 %v3916_v60  ;;  %901 = vmatpush1.msra.mxu1 %v3917_v15 }
 0x160   :  { %831 = vmatprep.subr.mxu0 %v3918_v0  ;;  %902 = vmatprep.subr.mxu1 %v3919_v34  ;;  %v3940_v34 = vld [vmem:[#allocation29_spill] sm:$0xff] }
 0x161   :  { %832 = vmatpush1.msra.mxu0 %v3920_v31  ;;  %903 = vmatpush1.msra.mxu1 %v3921_v42  ;;  %v3939_v31 = vld [vmem:[#allocation31_spill] sm:$0xff] }
 0x162   :  { %833 = vmatprep.subr.mxu0 %v3922_v29  ;;  %904 = vmatprep.subr.mxu1 %v3923_v32 }
 0x163   :  { %834 = vmatpush1.msra.mxu0 %v3924_v24  ;;  %905 = vmatpush1.msra.mxu1 %v3925_v27  ;;  %v3935_v27 = vld [vmem:[#allocation6_spill] sm:$0xff] }
 0x164   :  { %835 = vmatprep.subr.mxu0 %v3926_v26  ;;  %906 = vmatprep.subr.mxu1 %v3927_v20  ;;  %v3936_v26 = vld [vmem:[#allocation7_spill] sm:$0xff] }
 0x165   :  { %836 = vmatpush1.msra.mxu0 %v3928_v25  ;;  %907 = vmatpush1.msra.mxu1 %v3929_v23  ;;  %v3937_v25 = vld [vmem:[#allocation28_spill] sm:$0xff] }
 0x166   :  { %837 = vmatprep.subr.mxu0 %v3930_v28  ;;  %908 = vmatprep.subr.mxu1 %v3931_v33  ;;  %v3938_v28 = vld [vmem:[#allocation30_spill] sm:$0xff] }
 0x167   :  { %838 = vmatpush1.msra.mxu0 %v3932_v35  ;;  %871 = vmatprep.mubr.f32.mxu0 %v3933_v21 }
 0x168   :  { %909 = vmatpush1.msra.mxu1 %v3934_v6  ;;  %942 = vmatprep.mubr.f32.mxu1 %v3933_v21 }
 0x169   :  { %984 = vmatprep.subr.mxu0 %v3935_v27  ;;  %1055 = vmatprep.subr.mxu1 %v3936_v26 }
 0x208   :  { %v696_v20 = vpop.f32.mrf.mxu0  ;;  %v767_v33 = vpop.f32.mrf.mxu1 }
 0x209   :  { %v772_v24 = vadd.f32 %v696_v20, %v3937_v25  ;;  %v774_v21 = vadd.f32 %v767_v33, %v3940_v34 }
 0x20a   :  { %v698_v23 = vpop.f32.mrf.mxu0  ;;  %v769_v42 = vpop.f32.mrf.mxu1 }
 0x20b   :  { %v1987_v32 = vmul.f32 -1.442695, %v772_v24  ;;  %v773_v29 = vadd.f32 %v698_v23, %v3938_v28  ;;  %v775_v6 = vadd.f32 %v769_v42, %v3939_v31 }
 0x20d   :  { %2082 = vpow2.f32 %v1987_v32  ;;  %v1988_v35 = vmul.f32 -1.442695, %v773_v29  ;;  %v1989_v0 = vmul.f32 -1.442695, %v775_v6 }
 0x20f   :  { %2084 = vpow2.f32 %v1988_v35 }
 0x210   :  { %2086 = vtanh.f32 %v774_v21 }
 0x211   :  { %2088 = vpow2.f32 %v1989_v0 }
 0x21a   :  { %v2083_v27 = vpop.eup %2082 }
 0x21b   :  { %v779_v15 = vadd.f32 1.0, %v2083_v27 }
 0x21c   :  { %v2085_v26 = vpop.eup %2084 }
 0x21d   :  { %2090 = vrcp.f32 %v779_v15  ;;  %v785_v20 = vadd.f32 1.0, %v2085_v26  ;;  %v2087_v24 = vpop.eup %2086  ;;  %v3962_v15 = vld [vmem:[#allocation34_spill] sm:$0xff]  ;;  %v3963_v26 = vld [vmem:[#allocation35_spill] sm:$0xff] }
 0x21e   :  { %v2089_v25 = vpop.eup %2088 }
 0x21f   :  { %2092 = vrcp.f32 %v785_v20  ;;  %v792_v28 = vadd.f32 1.0, %v2089_v25 }
 0x221   :  { %2094 = vrcp.f32 %v792_v28 }
 0x22a   :  { %v2091_v32 = vpop.eup %2090 }
 0x22b   :  { %v796_v23 = vmul.f32 %v2091_v32, %v2087_v24  ;;  %v3964_v24 = vld [vmem:[#allocation33_spill] sm:$0xff] }
 0x22c   :  { %v2093_v29 = vpop.eup %2092 }
 0x22d   :  { %v795_v35 = vmul.f32 %v2093_v29, %v2926_v51 }
 0x22e   :  { %v2095_v34 = vpop.eup %2094 }
 0x22f   :  { %v3000_v31 = vadd.f32 %v796_v23, %v795_v35 }
 0x231   :  { %2096 = vtanh.f32 %v3000_v31 }
 0x23e   :  { %v2097_v42 = vpop.eup %2096 }
 0x23f   :  { %v799_v33 = vmul.f32 %v2097_v42, %v2095_v34 }
 0x241   :  { %872 = vmatmul.mubr.f32.vlgmr.msra.gmra.mxu0 %v799_v33  ;;  %943 = vmatmul.mubr.f32.vlgmr.msra.gmra.mxu1 %v799_v33 }
 0x242   :  { %985 = vmatpush1.msra.mxu0 %v2341_v36  ;;  %1056 = vmatpush1.msra.mxu1 %v2346_v37  ;;  %v3941_v36 = vld [vmem:[#allocation11_spill] sm:$0xff]  ;;  %v3942_v37 = vld [vmem:[#allocation12_spill] sm:$0xff] }
 0x243   :  { %986 = vmatprep.subr.mxu0 %v2353_v38  ;;  %1057 = vmatprep.subr.mxu1 %v2358_v39  ;;  %v3943_v38 = vld [vmem:[#allocation13_spill] sm:$0xff]  ;;  %v3944_v39 = vld [vmem:[#allocation14_spill] sm:$0xff] }
 0x244   :  { %987 = vmatpush1.msra.mxu0 %v2367_v40  ;;  %1058 = vmatpush1.msra.mxu1 %v2372_v41  ;;  %v3945_v40 = vld [vmem:[#allocation15_spill] sm:$0xff]  ;;  %v3946_v41 = vld [vmem:[#allocation16_spill] sm:$0xff] }
 0x245   :  { %988 = vmatprep.subr.mxu0 %v2384_v43  ;;  %1059 = vmatprep.subr.mxu1 %v2389_v44  ;;  %v3947_v43 = vld [vmem:[#allocation17_spill] sm:$0xff]  ;;  %v3948_v44 = vld [vmem:[#allocation18_spill] sm:$0xff] }
 0x246   :  { %989 = vmatpush1.msra.mxu0 %v2396_v45  ;;  %1060 = vmatpush1.msra.mxu1 %v2401_v46  ;;  %v3949_v45 = vld [vmem:[#allocation19_spill] sm:$0xff]  ;;  %v3950_v46 = vld [vmem:[#allocation20_spill] sm:$0xff] }
 0x247   :  { %990 = vmatprep.subr.mxu0 %v2408_v47  ;;  %1061 = vmatprep.subr.mxu1 %v2413_v48  ;;  %v3951_v47 = vld [vmem:[#allocation21_spill] sm:$0xff]  ;;  %v3952_v48 = vld [vmem:[#allocation22_spill] sm:$0xff] }
 0x248   :  { %991 = vmatpush1.msra.mxu0 %v2422_v49  ;;  %1062 = vmatpush1.msra.mxu1 %v2427_v50  ;;  %v3953_v49 = vld [vmem:[#allocation23_spill] sm:$0xff]  ;;  %v3954_v50 = vld [vmem:[#allocation24_spill] sm:$0xff] }
 0x249   :  { %992 = vmatprep.subr.mxu0 %v2439_v52  ;;  %1063 = vmatprep.subr.mxu1 %v2444_v53  ;;  %v3955_v52 = vld [vmem:[#allocation25_spill] sm:$0xff]  ;;  %v3956_v53 = vld [vmem:[#allocation26_spill] sm:$0xff] }
 0x24a   :  { %993 = vmatpush1.msra.mxu0 %v2451_v54  ;;  %1064 = vmatpush1.msra.mxu1 %v2456_v55  ;;  %v3957_v54 = vmov 0.0   ;;  %v3958_v55 = vld [vmem:[#allocation27_spill] sm:$0xff] }
 0x24b   :  { %994 = vmatprep.subr.mxu0 %v2463_v56  ;;  %1065 = vmatprep.subr.mxu1 %v2468_v57  ;;  %v3070_v56 = vld [vmem:[%s3769_s2 + $0x1e8] sm:$0xff]  ;;  %v3076_v57 = vld [vmem:[%s3769_s2 + $0x1f8] sm:$0xff] }
 0x24c   :  { %995 = vmatpush1.msra.mxu0 %v2477_v58  ;;  %1066 = vmatpush1.msra.mxu1 %v2482_v59  ;;  %3959 = vst [vmem:[#allocation8_spill] sm:$0xff] %v3070_v56  ;;  %3960 = vst [vmem:[#allocation9_spill] sm:$0xff] %v3076_v57  ;;  %v3961_v59 = vld [vmem:[#allocation32_spill] sm:$0xff] }
 0x24d   :  { %996 = vmatprep.subr.mxu0 %v2494_v61  ;;  %1067 = vmatprep.subr.mxu1 %v2499_v62 }
 0x24e   :  { %997 = vmatpush1.msra.mxu0 %v2506_v63  ;;  %1068 = vmatpush1.msra.mxu1 %v2511_v1 }
 0x24f   :  { %998 = vmatprep.subr.mxu0 %v2518_v2  ;;  %1069 = vmatprep.subr.mxu1 %v2523_v3 }
 0x250   :  { %999 = vmatpush1.msra.mxu0 %v2532_v4  ;;  %1070 = vmatpush1.msra.mxu1 %v2537_v5 }
 0x251   :  { %1000 = vmatprep.subr.mxu0 %v2549_v7  ;;  %1071 = vmatprep.subr.mxu1 %v2554_v8 }
 0x252   :  { %1001 = vmatpush1.msra.mxu0 %v2561_v9  ;;  %1072 = vmatpush1.msra.mxu1 %v2566_v10 }
 0x253   :  { %1002 = vmatprep.subr.mxu0 %v2573_v11  ;;  %1073 = vmatprep.subr.mxu1 %v2578_v12 }
 0x254   :  { %1003 = vmatpush1.msra.mxu0 %v2587_v13  ;;  %1074 = vmatpush1.msra.mxu1 %v2592_v14 }
 0x255   :  { %1004 = vmatprep.subr.mxu0 %v2604_v16  ;;  %1075 = vmatprep.subr.mxu1 %v2609_v17 }
 0x256   :  { %1005 = vmatpush1.msra.mxu0 %v2616_v18  ;;  %1076 = vmatpush1.msra.mxu1 %v2621_v19 }
 0x257   :  { %1006 = vmatprep.subr.mxu0 %v3914_v22  ;;  %1077 = vmatprep.subr.mxu1 %v3915_v30 }
 0x258   :  { %1007 = vmatpush1.msra.mxu0 %v3916_v60  ;;  %1078 = vmatpush1.msra.mxu1 %v3941_v36 }
 0x259   :  { %1008 = vmatprep.subr.mxu0 %v3942_v37  ;;  %1079 = vmatprep.subr.mxu1 %v3943_v38 }
 0x25a   :  { %1009 = vmatpush1.msra.mxu0 %v3944_v39  ;;  %1080 = vmatpush1.msra.mxu1 %v3945_v40 }
 0x25b   :  { %1010 = vmatprep.subr.mxu0 %v3946_v41  ;;  %1081 = vmatprep.subr.mxu1 %v3947_v43 }
 0x25c   :  { %1011 = vmatpush1.msra.mxu0 %v3948_v44  ;;  %1082 = vmatpush1.msra.mxu1 %v3949_v45 }
 0x25d   :  { %1012 = vmatprep.subr.mxu0 %v3950_v46  ;;  %1083 = vmatprep.subr.mxu1 %v3951_v47 }
 0x25e   :  { %1013 = vmatpush1.msra.mxu0 %v3952_v48  ;;  %1084 = vmatpush1.msra.mxu1 %v3953_v49 }
 0x25f   :  { %1014 = vmatprep.subr.mxu0 %v3954_v50  ;;  %1085 = vmatprep.subr.mxu1 %v3955_v52 }
 0x260   :  { %1015 = vmatpush1.msra.mxu0 %v3956_v53  ;;  %1048 = vmatprep.mubr.f32.mxu0 %v3957_v54 }
 0x261   :  { %1086 = vmatpush1.msra.mxu1 %v3958_v55  ;;  %1119 = vmatprep.mubr.f32.mxu1 %v3957_v54 }
 0x262   :  { %1161 = vmatprep.subr.mxu0 %v3070_v56  ;;  %1232 = vmatprep.subr.mxu1 %v3076_v57 }
 0x301   :  { %v873_v58 = vpop.f32.mrf.mxu0  ;;  %v944_v21 = vpop.f32.mrf.mxu1 }
 0x302   :  { %v949_v61 = vadd.f32 %v873_v58, %v3961_v59  ;;  %v951_v25 = vadd.f32 %v944_v21, %v3964_v24  ;;  %v3120_v24 = vld [vmem:[%s3769_s2 + $0x1d0] sm:$0xff] }
 0x303   :  { %v875_v62 = vpop.f32.mrf.mxu0  ;;  %v946_v27 = vpop.f32.mrf.mxu1 }
 0x304   :  { %v1990_v51 = vmul.f32 -1.442695, %v949_v61  ;;  %v950_v0 = vadd.f32 %v875_v62, %v3962_v15  ;;  %v952_v20 = vadd.f32 %v946_v27, %v3963_v26  ;;  %v3102_v27 = vld [vmem:[%s3769_s2 + $0x1c8] sm:$0xff]  ;;  %v3108_v26 = vld [vmem:[%s3769_s2 + $0x1d8] sm:$0xff] }
 0x306   :  { %2098 = vpow2.f32 %v1990_v51  ;;  %v1991_v6 = vmul.f32 -1.442695, %v950_v0  ;;  %v1992_v32 = vmul.f32 -1.442695, %v952_v20  ;;  %v3114_v20 = vld [vmem:[%s3769_s2 + $0x1c0] sm:$0xff] }
 0x308   :  { %2100 = vpow2.f32 %v1991_v6  ;;  %v3090_v6 = vld [vmem:[%s3769_s2 + $0x1e0] sm:$0xff] }
 0x309   :  { %2102 = vtanh.f32 %v951_v25  ;;  %v3126_v25 = vld [vmem:[%s3769_s2 + $0x1a8] sm:$0xff] }
 0x30a   :  { %2104 = vpow2.f32 %v1992_v32  ;;  %v3132_v32 = vld [vmem:[%s3769_s2 + $0x1b8] sm:$0xff] }
 0x313   :  { %v2099_v23 = vpop.eup %2098 }
 0x314   :  { %v956_v29 = vadd.f32 1.0, %v2099_v23  ;;  %v3138_v23 = vld [vmem:[%s3769_s2 + $0x1a0] sm:$0xff] }
 0x315   :  { %v2101_v28 = vpop.eup %2100 }
 0x316   :  { %2106 = vrcp.f32 %v956_v29  ;;  %v962_v35 = vadd.f32 1.0, %v2101_v28  ;;  %v2103_v34 = vpop.eup %2102  ;;  %v3144_v29 = vld [vmem:[%s3769_s2 + $0x1b0] sm:$0xff]  ;;  %v3150_v28 = vld [vmem:[%s3769_s2 + $0x188] sm:$0xff] }
 0x317   :  { %v2105_v42 = vpop.eup %2104 }
 0x318   :  { %2108 = vrcp.f32 %v962_v35  ;;  %v969_v61 = vadd.f32 1.0, %v2105_v42  ;;  %v3156_v35 = vld [vmem:[%s3769_s2 + $0x198] sm:$0xff]  ;;  %v3168_v42 = vld [vmem:[%s3769_s2 + $0x190] sm:$0xff] }
 0x31a   :  { %2110 = vrcp.f32 %v969_v61  ;;  %v3192_v61 = vld [vmem:[%s3769_s2 + $0x170] sm:$0xff] }
 0x323   :  { %v2107_v33 = vpop.eup %2106 }
 0x324   :  { %v973_v58 = vmul.f32 %v2107_v33, %v2103_v34  ;;  %v3162_v34 = vld [vmem:[%s3769_s2 + $0x180] sm:$0xff]  ;;  %v3174_v33 = vld [vmem:[%s3769_s2 + $0x168] sm:$0xff] }
 0x325   :  { %v2109_v59 = vpop.eup %2108 }
 0x326   :  { %v972_v62 = vmul.f32 %v2109_v59, %v3000_v31  ;;  %v3096_v31 = vld [vmem:[%s3769_s2 + $0x1f0] sm:$0xff]  ;;  %v3186_v59 = vld [vmem:[%s3769_s2 + $0x160] sm:$0xff] }
 0x327   :  { %v2111_v15 = vpop.eup %2110 }
 0x328   :  { %v3084_v51 = vadd.f32 %v973_v58, %v972_v62  ;;  %v3180_v58 = vld [vmem:[%s3769_s2 + $0x178] sm:$0xff]  ;;  %v3198_v62 = vld [vmem:[%s3769_s2 + $0x148] sm:$0xff] }
 0x329   :  { %3965 = vst [vmem:[#allocation10_spill] sm:$0xff] %v3198_v62 }
 0x32a   :  { %2112 = vtanh.f32 %v3084_v51 }
 0x337   :  { %v2113_v0 = vpop.eup %2112 }
 0x338   :  { %v976_v21 = vmul.f32 %v2113_v0, %v2111_v15  ;;  %v3204_v15 = vld [vmem:[%s3769_s2 + $0x158] sm:$0xff]  ;;  %v3210_v0 = vld [vmem:[%s3769_s2 + $0x140] sm:$0xff] }
 0x339   :  { %3966 = vst [vmem:[#allocation6_spill] sm:$0xff] %v3204_v15 }
 0x33a   :  { %1049 = vmatmul.mubr.f32.vlgmr.msra.gmra.mxu0 %v976_v21  ;;  %1120 = vmatmul.mubr.f32.vlgmr.msra.gmra.mxu1 %v976_v21  ;;  %v3216_v21 = vld [vmem:[%s3769_s2 + $0x150] sm:$0xff] }
 0x33b   :  { %1162 = vmatpush1.msra.mxu0 %v3090_v6  ;;  %1233 = vmatpush1.msra.mxu1 %v3096_v31 }
 0x33c   :  { %1163 = vmatprep.subr.mxu0 %v3102_v27  ;;  %1234 = vmatprep.subr.mxu1 %v3108_v26 }
 0x33d   :  { %1164 = vmatpush1.msra.mxu0 %v3114_v20  ;;  %1235 = vmatpush1.msra.mxu1 %v3120_v24 }
 0x33e   :  { %1165 = vmatprep.subr.mxu0 %v3126_v25  ;;  %1236 = vmatprep.subr.mxu1 %v3132_v32 }
 0x33f   :  { %1166 = vmatpush1.msra.mxu0 %v3138_v23  ;;  %1237 = vmatpush1.msra.mxu1 %v3144_v29 }
 0x340   :  { %1167 = vmatprep.subr.mxu0 %v3150_v28  ;;  %1238 = vmatprep.subr.mxu1 %v3156_v35 }
 0x341   :  { %1168 = vmatpush1.msra.mxu0 %v3162_v34  ;;  %1239 = vmatpush1.msra.mxu1 %v3168_v42 }
 0x342   :  { %1169 = vmatprep.subr.mxu0 %v3174_v33  ;;  %1240 = vmatprep.subr.mxu1 %v3180_v58 }
 0x343   :  { %1170 = vmatpush1.msra.mxu0 %v3186_v59  ;;  %1241 = vmatpush1.msra.mxu1 %v3192_v61 }
 0x344   :  { %1171 = vmatprep.subr.mxu0 %v3198_v62  ;;  %1242 = vmatprep.subr.mxu1 %v3204_v15  ;;  %v3222_v62 = vld [vmem:[%s3769_s2 + $0x128] sm:$0xff]  ;;  %v3228_v15 = vld [vmem:[%s3769_s2 + $0x138] sm:$0xff] }
 0x345   :  { %1172 = vmatpush1.msra.mxu0 %v3210_v0  ;;  %1243 = vmatpush1.msra.mxu1 %v3216_v21 }
 0x346   :  { %1173 = vmatprep.subr.mxu0 %v3222_v62  ;;  %1244 = vmatprep.subr.mxu1 %v3228_v15 }
 0x347   :  { %1174 = vmatpush1.msra.mxu0 %v2506_v63  ;;  %1245 = vmatpush1.msra.mxu1 %v2511_v1  ;;  %v3967_v1 = vld [vmem:[#allocation36_spill] sm:$0xff] }
 0x348   :  { %1175 = vmatprep.subr.mxu0 %v2518_v2  ;;  %1246 = vmatprep.subr.mxu1 %v2523_v3 }
 0x349   :  { %1176 = vmatpush1.msra.mxu0 %v2532_v4  ;;  %1247 = vmatpush1.msra.mxu1 %v2537_v5  ;;  %v3968_v5 = vld [vmem:[#allocation38_spill] sm:$0xff] }
 0x34a   :  { %1177 = vmatprep.subr.mxu0 %v2549_v7  ;;  %1248 = vmatprep.subr.mxu1 %v2554_v8 }
 0x34b   :  { %1178 = vmatpush1.msra.mxu0 %v2561_v9  ;;  %1249 = vmatpush1.msra.mxu1 %v2566_v10 }
 0x34c   :  { %1179 = vmatprep.subr.mxu0 %v2573_v11  ;;  %1250 = vmatprep.subr.mxu1 %v2578_v12  ;;  %v3969_v11 = vld [vmem:[#allocation39_spill] sm:$0xff] }
 0x34d   :  { %1180 = vmatpush1.msra.mxu0 %v2587_v13  ;;  %1251 = vmatpush1.msra.mxu1 %v2592_v14  ;;  %v3970_v13 = vld [vmem:[#allocation37_spill] sm:$0xff] }
 0x34e   :  { %1181 = vmatprep.subr.mxu0 %v2604_v16  ;;  %1252 = vmatprep.subr.mxu1 %v2609_v17 }
 0x34f   :  { %1182 = vmatpush1.msra.mxu0 %v2616_v18  ;;  %1253 = vmatpush1.msra.mxu1 %v2621_v19 }
 0x350   :  { %1183 = vmatprep.subr.mxu0 %v3914_v22  ;;  %1254 = vmatprep.subr.mxu1 %v3915_v30 }
 0x351   :  { %1184 = vmatpush1.msra.mxu0 %v3916_v60  ;;  %1255 = vmatpush1.msra.mxu1 %v3941_v36 }
 0x352   :  { %1185 = vmatprep.subr.mxu0 %v3942_v37  ;;  %1256 = vmatprep.subr.mxu1 %v3943_v38 }
 0x353   :  { %1186 = vmatpush1.msra.mxu0 %v3944_v39  ;;  %1257 = vmatpush1.msra.mxu1 %v3945_v40 }
 0x354   :  { %1187 = vmatprep.subr.mxu0 %v3946_v41  ;;  %1258 = vmatprep.subr.mxu1 %v3947_v43 }
 0x355   :  { %1188 = vmatpush1.msra.mxu0 %v3948_v44  ;;  %1259 = vmatpush1.msra.mxu1 %v3949_v45 }
 0x356   :  { %1189 = vmatprep.subr.mxu0 %v3950_v46  ;;  %1260 = vmatprep.subr.mxu1 %v3951_v47  ;;  %v3971_v46 = vld [vmem:[#allocation10_spill] sm:$0xff] }
 0x357   :  { %1190 = vmatpush1.msra.mxu0 %v3952_v48  ;;  %1261 = vmatpush1.msra.mxu1 %v3953_v49  ;;  %v3972_v47 = vld [vmem:[#allocation6_spill] sm:$0xff]  ;;  %v3314_v49 = vld [vmem:[%s3769_s2 + $0x130] sm:$0xff] }
 0x358   :  { %1191 = vmatprep.subr.mxu0 %v3954_v50  ;;  %1262 = vmatprep.subr.mxu1 %v3955_v52  ;;  %v3308_v48 = vld [vmem:[%s3769_s2 + $0x120] sm:$0xff]  ;;  %v3320_v50 = vld [vmem:[%s3769_s2 + $0x108] sm:$0xff]  ;;  %v3326_v52 = vld [vmem:[%s3769_s2 + $0x118] sm:$0xff] }
 0x359   :  { %1192 = vmatpush1.msra.mxu0 %v3956_v53  ;;  %1225 = vmatprep.mubr.f32.mxu0 %v3957_v54  ;;  %v3332_v53 = vld [vmem:[%s3769_s2 + $0x100] sm:$0xff] }
 0x35a   :  { %1263 = vmatpush1.msra.mxu1 %v3958_v55  ;;  %1296 = vmatprep.mubr.f32.mxu1 %v3957_v54  ;;  %v3338_v55 = vld [vmem:[%s3769_s2 + $0x110] sm:$0xff] }
 0x35b   :  { %1338 = vmatprep.subr.mxu0 %v3070_v56  ;;  %1409 = vmatprep.subr.mxu1 %v3076_v57 }
 0x3fa   :  { %v1050_v63 = vpop.f32.mrf.mxu0  ;;  %v1121_v8 = vpop.f32.mrf.mxu1 }
 0x3fb   :  { %v1126_v2 = vadd.f32 %v1050_v63, %v3967_v1  ;;  %v1128_v14 = vadd.f32 %v1121_v8, %v3970_v13  ;;  %v3350_v63 = vld [vmem:[%s3769_s2 + $0xf8] sm:$0xff]  ;;  %v3356_v1 = vld [vmem:[%s3769_s2 + $0xe0] sm:$0xff]  ;;  %v3392_v8 = vld [vmem:[%s3769_s2 + $0xa8] sm:$0xff] }
 0x3fc   :  { %v1052_v3 = vpop.f32.mrf.mxu0  ;;  %v1123_v10 = vpop.f32.mrf.mxu1  ;;  %v3422_v13 = vld [vmem:[%s3769_s2 + $0x98] sm:$0xff] }
 0x3fd   :  { %v1993_v4 = vmul.f32 -1.442695, %v1126_v2  ;;  %v1127_v7 = vadd.f32 %v1052_v3, %v3968_v5  ;;  %v1129_v12 = vadd.f32 %v1123_v10, %v3969_v11  ;;  %v3362_v2 = vld [vmem:[%s3769_s2 + $0xf0] sm:$0xff]  ;;  %v3368_v3 = vld [vmem:[%s3769_s2 + $0xc8] sm:$0xff]  ;;  %v3380_v5 = vld [vmem:[%s3769_s2 + $0xc0] sm:$0xff] }
 0x3fe   :  { %v3404_v10 = vld [vmem:[%s3769_s2 + $0xa0] sm:$0xff]  ;;  %v3410_v11 = vld [vmem:[%s3769_s2 + $0xb0] sm:$0xff] }
 0x3ff   :  { %2114 = vpow2.f32 %v1993_v4  ;;  %v1994_v9 = vmul.f32 -1.442695, %v1127_v7  ;;  %v1995_v16 = vmul.f32 -1.442695, %v1129_v12  ;;  %v3374_v4 = vld [vmem:[%s3769_s2 + $0xd8] sm:$0xff]  ;;  %v3386_v7 = vld [vmem:[%s3769_s2 + $0xd0] sm:$0xff] }
 0x400   :  { %v3416_v12 = vld [vmem:[%s3769_s2 + $0x88] sm:$0xff] }
 0x401   :  { %2116 = vpow2.f32 %v1994_v9  ;;  %v3398_v9 = vld [vmem:[%s3769_s2 + $0xb8] sm:$0xff] }
 0x402   :  { %2118 = vtanh.f32 %v1128_v14  ;;  %v3428_v14 = vld [vmem:[%s3769_s2 + $0x80] sm:$0xff] }
 0x403   :  { %2120 = vpow2.f32 %v1995_v16  ;;  %v3434_v16 = vld [vmem:[%s3769_s2 + $0x90] sm:$0xff] }
 0x404   :  { %3973 = vst [vmem:[#allocation7_spill] sm:$0xff] %v3434_v16 }
 0x40c   :  { %v2115_v17 = vpop.eup %2114 }
 0x40d   :  { %v1133_v18 = vadd.f32 1.0, %v2115_v17  ;;  %v3440_v17 = vld [vmem:[%s3769_s2 + $0x68] sm:$0xff] }
 0x40e   :  { %v2117_v19 = vpop.eup %2116  ;;  %3974 = vst [vmem:[#allocation28_spill] sm:$0xff] %v3440_v17 }
 0x40f   :  { %2122 = vrcp.f32 %v1133_v18  ;;  %v1139_v22 = vadd.f32 1.0, %v2117_v19  ;;  %v2119_v30 = vpop.eup %2118  ;;  %v3446_v18 = vld [vmem:[%s3769_s2 + $0x78] sm:$0xff]  ;;  %v3452_v19 = vld [vmem:[%s3769_s2 + $0x60] sm:$0xff] }
 0x410   :  { %v2121_v60 = vpop.eup %2120  ;;  %3975 = vst [vmem:[#allocation30_spill] sm:$0xff] %v3446_v18  ;;  %3976 = vst [vmem:[#allocation31_spill] sm:$0xff] %v3452_v19 }
 0x411   :  { %2124 = vrcp.f32 %v1139_v22  ;;  %v1146_v39 = vadd.f32 1.0, %v2121_v60  ;;  %v3458_v22 = vld [vmem:[%s3769_s2 + $0x70] sm:$0xff]  ;;  %v3470_v60 = vld [vmem:[%s3769_s2 + $0x58] sm:$0xff] }
 0x412   :  { %3977 = vst [vmem:[#allocation29_spill] sm:$0xff] %v3458_v22  ;;  %3979 = vst [vmem:[#allocation12_spill] sm:$0xff] %v3470_v60 }
 0x413   :  { %2126 = vrcp.f32 %v1146_v39  ;;  %v3494_v39 = vld [vmem:[%s3769_s2 + $0x38] sm:$0xff] }
 0x414   :  { %3983 = vst [vmem:[#allocation16_spill] sm:$0xff] %v3494_v39 }
 0x41c   :  { %v2123_v36 = vpop.eup %2122 }
 0x41d   :  { %v1150_v37 = vmul.f32 %v2123_v36, %v2119_v30  ;;  %v3464_v30 = vld [vmem:[%s3769_s2 + $0x48] sm:$0xff]  ;;  %v3476_v36 = vld [vmem:[%s3769_s2 + $0x40] sm:$0xff] }
 0x41e   :  { %v2125_v38 = vpop.eup %2124  ;;  %3978 = vst [vmem:[#allocation11_spill] sm:$0xff] %v3464_v30  ;;  %3980 = vst [vmem:[#allocation13_spill] sm:$0xff] %v3476_v36 }
 0x41f   :  { %v1149_v40 = vmul.f32 %v2125_v38, %v3084_v51  ;;  %v3344_v51 = vld [vmem:[%s3769_s2 + $0xe8] sm:$0xff] }
 0x420   :  { %v2127_v43 = vpop.eup %2126  ;;  %v3488_v38 = vld [vmem:[%s3769_s2 + $0x28] sm:$0xff] }
 0x421   :  { %v3278_v41 = vadd.f32 %v1150_v37, %v1149_v40  ;;  %v3482_v37 = vld [vmem:[%s3769_s2 + $0x50] sm:$0xff]  ;;  %3982 = vst [vmem:[#allocation15_spill] sm:$0xff] %v3488_v38  ;;  %v3500_v40 = vld [vmem:[%s3769_s2 + $0x20] sm:$0xff] }
 0x422   :  { %3981 = vst [vmem:[#allocation14_spill] sm:$0xff] %v3482_v37  ;;  %3984 = vst [vmem:[#allocation17_spill] sm:$0xff] %v3500_v40 }
 0x423   :  { %2128 = vtanh.f32 %v3278_v41 }
 0x430   :  { %v2129_v44 = vpop.eup %2128 }
 0x431   :  { %v1153_v45 = vmul.f32 %v2129_v44, %v2127_v43  ;;  %v3506_v43 = vld [vmem:[%s3769_s2 + $0x30] sm:$0xff]  ;;  %v3512_v44 = vld [vmem:[%s3769_s2 + $0x8] sm:$0xff] }
 0x432   :  { %3985 = vst [vmem:[#allocation18_spill] sm:$0xff] %v3506_v43  ;;  %3986 = vst [vmem:[#allocation19_spill] sm:$0xff] %v3512_v44 }
 0x433   :  { %1226 = vmatmul.mubr.f32.vlgmr.msra.gmra.mxu0 %v1153_v45  ;;  %1297 = vmatmul.mubr.f32.vlgmr.msra.gmra.mxu1 %v1153_v45  ;;  %v3518_v45 = vld [vmem:[%s3769_s2 + $0x18] sm:$0xff] }
 0x434   :  { %1339 = vmatpush1.msra.mxu0 %v3090_v6  ;;  %1410 = vmatpush1.msra.mxu1 %v3096_v31  ;;  %3987 = vst [vmem:[#allocation20_spill] sm:$0xff] %v3518_v45 }
 0x435   :  { %1340 = vmatprep.subr.mxu0 %v3102_v27  ;;  %1411 = vmatprep.subr.mxu1 %v3108_v26 }
 0x436   :  { %1341 = vmatpush1.msra.mxu0 %v3114_v20  ;;  %1412 = vmatpush1.msra.mxu1 %v3120_v24 }
 0x437   :  { %1342 = vmatprep.subr.mxu0 %v3126_v25  ;;  %1413 = vmatprep.subr.mxu1 %v3132_v32 }
 0x438   :  { %1343 = vmatpush1.msra.mxu0 %v3138_v23  ;;  %1414 = vmatpush1.msra.mxu1 %v3144_v29 }
 0x439   :  { %1344 = vmatprep.subr.mxu0 %v3150_v28  ;;  %1415 = vmatprep.subr.mxu1 %v3156_v35 }
 0x43a   :  { %1345 = vmatpush1.msra.mxu0 %v3162_v34  ;;  %1416 = vmatpush1.msra.mxu1 %v3168_v42 }
 0x43b   :  { %1346 = vmatprep.subr.mxu0 %v3174_v33  ;;  %1417 = vmatprep.subr.mxu1 %v3180_v58 }
 0x43c   :  { %1347 = vmatpush1.msra.mxu0 %v3186_v59  ;;  %1418 = vmatpush1.msra.mxu1 %v3192_v61 }
 0x43d   :  { %1348 = vmatprep.subr.mxu0 %v3971_v46  ;;  %1419 = vmatprep.subr.mxu1 %v3972_v47 }
 0x43e   :  { %1349 = vmatpush1.msra.mxu0 %v3210_v0  ;;  %1420 = vmatpush1.msra.mxu1 %v3216_v21 }
 0x43f   :  { %1350 = vmatprep.subr.mxu0 %v3222_v62  ;;  %1421 = vmatprep.subr.mxu1 %v3228_v15 }
 0x440   :  { %1351 = vmatpush1.msra.mxu0 %v3308_v48  ;;  %1422 = vmatpush1.msra.mxu1 %v3314_v49 }
 0x441   :  { %1352 = vmatprep.subr.mxu0 %v3320_v50  ;;  %1423 = vmatprep.subr.mxu1 %v3326_v52 }
 0x442   :  { %1353 = vmatpush1.msra.mxu0 %v3332_v53  ;;  %1424 = vmatpush1.msra.mxu1 %v3338_v55 }
 0x443   :  { %1354 = vmatprep.subr.mxu0 %v3344_v51  ;;  %1425 = vmatprep.subr.mxu1 %v3350_v63 }
 0x444   :  { %1355 = vmatpush1.msra.mxu0 %v3356_v1  ;;  %1426 = vmatpush1.msra.mxu1 %v3362_v2 }
 0x445   :  { %1356 = vmatprep.subr.mxu0 %v3368_v3  ;;  %1427 = vmatprep.subr.mxu1 %v3374_v4 }
 0x446   :  { %1357 = vmatpush1.msra.mxu0 %v3380_v5  ;;  %1428 = vmatpush1.msra.mxu1 %v3386_v7 }
 0x447   :  { %1358 = vmatprep.subr.mxu0 %v3392_v8  ;;  %1429 = vmatprep.subr.mxu1 %v3398_v9 }
 0x448   :  { %1359 = vmatpush1.msra.mxu0 %v3404_v10  ;;  %1430 = vmatpush1.msra.mxu1 %v3410_v11 }
 0x449   :  { %1360 = vmatprep.subr.mxu0 %v3416_v12  ;;  %1431 = vmatprep.subr.mxu1 %v3422_v13 }
 0x44a   :  { %1361 = vmatpush1.msra.mxu0 %v3428_v14  ;;  %1432 = vmatpush1.msra.mxu1 %v3434_v16 }
 0x44b   :  { %1362 = vmatprep.subr.mxu0 %v3440_v17  ;;  %1433 = vmatprep.subr.mxu1 %v3446_v18  ;;  %v3993_v18 = vld [vmem:[#allocation41_spill] sm:$0xff] }
 0x44c   :  { %1363 = vmatpush1.msra.mxu0 %v3452_v19  ;;  %1434 = vmatpush1.msra.mxu1 %v3458_v22  ;;  %v3992_v19 = vld [vmem:[#allocation43_spill] sm:$0xff] }
 0x44d   :  { %1364 = vmatprep.subr.mxu0 %v3464_v30  ;;  %1435 = vmatprep.subr.mxu1 %v3470_v60 }
 0x44e   :  { %1365 = vmatpush1.msra.mxu0 %v3476_v36  ;;  %1436 = vmatpush1.msra.mxu1 %v3482_v37  ;;  %v3991_v37 = vld [vmem:[#allocation42_spill] sm:$0xff] }
 0x44f   :  { %1366 = vmatprep.subr.mxu0 %v3488_v38  ;;  %1437 = vmatprep.subr.mxu1 %v3494_v39 }
 0x450   :  { %1367 = vmatpush1.msra.mxu0 %v3500_v40  ;;  %1438 = vmatpush1.msra.mxu1 %v3506_v43  ;;  %v3524_v40 = vld [vmem:[%s3769_s2] sm:$0xff]  ;;  %v3990_v43 = vld [vmem:[#allocation40_spill] sm:$0xff] }
 0x451   :  { %1368 = vmatprep.subr.mxu0 %v3512_v44  ;;  %1439 = vmatprep.subr.mxu1 %v3518_v45  ;;  %3988 = vst [vmem:[#allocation21_spill] sm:$0xff] %v3524_v40  ;;  %v3531_v44 = vld [vmem:[%s3769_s2 + $0x10] sm:$0xff] }
 0x452   :  { %1369 = vmatpush1.msra.mxu0 %v3524_v40  ;;  %1402 = vmatprep.mubr.f32.mxu0 %v3957_v54  ;;  %3989 = vst [vmem:[#allocation22_spill] sm:$0xff] %v3531_v44 }
 0x453   :  { %1440 = vmatpush1.msra.mxu1 %v3531_v44  ;;  %1473 = vmatprep.mubr.f32.mxu1 %v3957_v54 }
 0x454   :  { %1515 = vmatprep.subr.mxu0 %v3070_v56  ;;  %1586 = vmatprep.subr.mxu1 %v3076_v57 }
 0x4f3   :  { %v1227_v45 = vpop.f32.mrf.mxu0  ;;  %v1298_v60 = vpop.f32.mrf.mxu1 }
 0x4f4   :  { %v1303_v39 = vadd.f32 %v1227_v45, %v3990_v43  ;;  %v1305_v54 = vadd.f32 %v1298_v60, %v3993_v18  ;;  %v3999_v60 = vld [vmem:[#allocation11_spill] sm:$0xff] }
 0x4f5   :  { %v1229_v38 = vpop.f32.mrf.mxu0  ;;  %v1300_v22 = vpop.f32.mrf.mxu1 }
 0x4f6   :  { %v1996_v40 = vmul.f32 -1.442695, %v1303_v39  ;;  %v1304_v36 = vadd.f32 %v1229_v38, %v3991_v37  ;;  %v1306_v44 = vadd.f32 %v1300_v22, %v3992_v19  ;;  %v3998_v22 = vld [vmem:[#allocation29_spill] sm:$0xff] }
 0x4f8   :  { %2130 = vpow2.f32 %v1996_v40  ;;  %v1997_v30 = vmul.f32 -1.442695, %v1304_v36  ;;  %v1998_v17 = vmul.f32 -1.442695, %v1306_v44  ;;  %v4000_v44 = vld [vmem:[#allocation12_spill] sm:$0xff] }
 0x4fa   :  { %2132 = vpow2.f32 %v1997_v30 }
 0x4fb   :  { %2134 = vtanh.f32 %v1305_v54 }
 0x4fc   :  { %2136 = vpow2.f32 %v1998_v17  ;;  %v3997_v17 = vld [vmem:[#allocation31_spill] sm:$0xff] }
 0x505   :  { %v2131_v56 = vpop.eup %2130 }
 0x506   :  { %v1310_v16 = vadd.f32 1.0, %v2131_v56 }
 0x507   :  { %v2133_v57 = vpop.eup %2132 }
 0x508   :  { %2138 = vrcp.f32 %v1310_v16  ;;  %v1316_v43 = vadd.f32 1.0, %v2133_v57  ;;  %v2135_v39 = vpop.eup %2134  ;;  %v3994_v57 = vld [vmem:[#allocation7_spill] sm:$0xff]  ;;  %v3996_v16 = vld [vmem:[#allocation30_spill] sm:$0xff] }
 0x509   :  { %v2137_v37 = vpop.eup %2136 }
 0x50a   :  { %2140 = vrcp.f32 %v1316_v43  ;;  %v1323_v30 = vadd.f32 1.0, %v2137_v37  ;;  %v4001_v43 = vld [vmem:[#allocation13_spill] sm:$0xff]  ;;  %v4003_v37 = vld [vmem:[#allocation15_spill] sm:$0xff] }
 0x50c   :  { %2142 = vrcp.f32 %v1323_v30  ;;  %v4007_v30 = vld [vmem:[#allocation19_spill] sm:$0xff] }
 0x515   :  { %v2139_v38 = vpop.eup %2138 }
 0x516   :  { %v1327_v40 = vmul.f32 %v2139_v38, %v2135_v39  ;;  %v4002_v39 = vld [vmem:[#allocation14_spill] sm:$0xff]  ;;  %v4004_v38 = vld [vmem:[#allocation16_spill] sm:$0xff] }
 0x517   :  { %v2141_v36 = vpop.eup %2140 }
 0x518   :  { %v1326_v45 = vmul.f32 %v2141_v36, %v3278_v41  ;;  %v3995_v41 = vld [vmem:[#allocation28_spill] sm:$0xff]  ;;  %v4006_v36 = vld [vmem:[#allocation18_spill] sm:$0xff] }
 0x519   :  { %v2143_v56 = vpop.eup %2142 }
 0x51a   :  { %v3542_v19 = vadd.f32 %v1327_v40, %v1326_v45  ;;  %v4005_v40 = vld [vmem:[#allocation17_spill] sm:$0xff]  ;;  %v4008_v45 = vld [vmem:[#allocation20_spill] sm:$0xff] }
 0x51c   :  { %2144 = vtanh.f32 %v3542_v19 }
 0x529   :  { %v2145_v54 = vpop.eup %2144 }
 0x52a   :  { %v1330_v18 = vmul.f32 %v2145_v54, %v2143_v56  ;;  %v4009_v56 = vld [vmem:[#allocation21_spill] sm:$0xff]  ;;  %v4010_v54 = vmov 0.0  }
 0x52c   :  { %1403 = vmatmul.mubr.f32.vlgmr.msra.gmra.mxu0 %v1330_v18  ;;  %1474 = vmatmul.mubr.f32.vlgmr.msra.gmra.mxu1 %v1330_v18  ;;  %v4011_v18 = vld [vmem:[#allocation22_spill] sm:$0xff] }
 0x52d   :  { %1516 = vmatpush1.msra.mxu0 %v3090_v6  ;;  %1587 = vmatpush1.msra.mxu1 %v3096_v31 }
 0x52e   :  { %1517 = vmatprep.subr.mxu0 %v3102_v27  ;;  %1588 = vmatprep.subr.mxu1 %v3108_v26 }
 0x52f   :  { %1518 = vmatpush1.msra.mxu0 %v3114_v20  ;;  %1589 = vmatpush1.msra.mxu1 %v3120_v24 }
 0x530   :  { %1519 = vmatprep.subr.mxu0 %v3126_v25  ;;  %1590 = vmatprep.subr.mxu1 %v3132_v32 }
 0x531   :  { %1520 = vmatpush1.msra.mxu0 %v3138_v23  ;;  %1591 = vmatpush1.msra.mxu1 %v3144_v29 }
 0x532   :  { %1521 = vmatprep.subr.mxu0 %v3150_v28  ;;  %1592 = vmatprep.subr.mxu1 %v3156_v35 }
 0x533   :  { %1522 = vmatpush1.msra.mxu0 %v3162_v34  ;;  %1593 = vmatpush1.msra.mxu1 %v3168_v42 }
 0x534   :  { %1523 = vmatprep.subr.mxu0 %v3174_v33  ;;  %1594 = vmatprep.subr.mxu1 %v3180_v58 }
 0x535   :  { %1524 = vmatpush1.msra.mxu0 %v3186_v59  ;;  %1595 = vmatpush1.msra.mxu1 %v3192_v61 }
 0x536   :  { %1525 = vmatprep.subr.mxu0 %v3971_v46  ;;  %1596 = vmatprep.subr.mxu1 %v3972_v47 }
 0x537   :  { %1526 = vmatpush1.msra.mxu0 %v3210_v0  ;;  %1597 = vmatpush1.msra.mxu1 %v3216_v21 }
 0x538   :  { %1527 = vmatprep.subr.mxu0 %v3222_v62  ;;  %1598 = vmatprep.subr.mxu1 %v3228_v15 }
 0x539   :  { %1528 = vmatpush1.msra.mxu0 %v3308_v48  ;;  %1599 = vmatpush1.msra.mxu1 %v3314_v49 }
 0x53a   :  { %1529 = vmatprep.subr.mxu0 %v3320_v50  ;;  %1600 = vmatprep.subr.mxu1 %v3326_v52 }
 0x53b   :  { %1530 = vmatpush1.msra.mxu0 %v3332_v53  ;;  %1601 = vmatpush1.msra.mxu1 %v3338_v55 }
 0x53c   :  { %1531 = vmatprep.subr.mxu0 %v3344_v51  ;;  %1602 = vmatprep.subr.mxu1 %v3350_v63 }
 0x53d   :  { %1532 = vmatpush1.msra.mxu0 %v3356_v1  ;;  %1603 = vmatpush1.msra.mxu1 %v3362_v2 }
 0x53e   :  { %1533 = vmatprep.subr.mxu0 %v3368_v3  ;;  %1604 = vmatprep.subr.mxu1 %v3374_v4 }
 0x53f   :  { %1534 = vmatpush1.msra.mxu0 %v3380_v5  ;;  %1605 = vmatpush1.msra.mxu1 %v3386_v7 }
 0x540   :  { %1535 = vmatprep.subr.mxu0 %v3392_v8  ;;  %1606 = vmatprep.subr.mxu1 %v3398_v9 }
 0x541   :  { %1536 = vmatpush1.msra.mxu0 %v3404_v10  ;;  %1607 = vmatpush1.msra.mxu1 %v3410_v11 }
 0x542   :  { %1537 = vmatprep.subr.mxu0 %v3416_v12  ;;  %1608 = vmatprep.subr.mxu1 %v3422_v13 }
 0x543   :  { %1538 = vmatpush1.msra.mxu0 %v3428_v14  ;;  %1609 = vmatpush1.msra.mxu1 %v3994_v57 }
 0x544   :  { %1539 = vmatprep.subr.mxu0 %v3995_v41  ;;  %1610 = vmatprep.subr.mxu1 %v3996_v16  ;;  %v4017_v16 = vld [vmem:[#allocation45_spill] sm:$0xff] }
 0x545   :  { %1540 = vmatpush1.msra.mxu0 %v3997_v17  ;;  %1611 = vmatpush1.msra.mxu1 %v3998_v22  ;;  %v4016_v17 = vld [vmem:[#allocation47_spill] sm:$0xff] }
 0x546   :  { %1541 = vmatprep.subr.mxu0 %v3999_v60  ;;  %1612 = vmatprep.subr.mxu1 %v4000_v44 }
 0x547   :  { %1542 = vmatpush1.msra.mxu0 %v4001_v43  ;;  %1613 = vmatpush1.msra.mxu1 %v4002_v39  ;;  %v4012_v39 = vld [vmem:[#allocation8_spill] sm:$0xff] }
 0x548   :  { %1543 = vmatprep.subr.mxu0 %v4003_v37  ;;  %1614 = vmatprep.subr.mxu1 %v4004_v38  ;;  %v4013_v37 = vld [vmem:[#allocation9_spill] sm:$0xff] }
 0x549   :  { %1544 = vmatpush1.msra.mxu0 %v4005_v40  ;;  %1615 = vmatpush1.msra.mxu1 %v4006_v36  ;;  %v4014_v40 = vld [vmem:[#allocation44_spill] sm:$0xff] }
 0x54a   :  { %1545 = vmatprep.subr.mxu0 %v4007_v30  ;;  %1616 = vmatprep.subr.mxu1 %v4008_v45  ;;  %v4015_v30 = vld [vmem:[#allocation46_spill] sm:$0xff] }
 0x54b   :  { %1546 = vmatpush1.msra.mxu0 %v4009_v56  ;;  %1579 = vmatprep.mubr.f32.mxu0 %v4010_v54 }
 0x54c   :  { %1617 = vmatpush1.msra.mxu1 %v4011_v18  ;;  %1650 = vmatprep.mubr.f32.mxu1 %v4010_v54 }
 0x54d   :  { %1692 = vmatprep.subr.mxu0 %v4012_v39  ;;  %1763 = vmatprep.subr.mxu1 %v4013_v37 }
 0x5ec   :  { %v1404_v38 = vpop.f32.mrf.mxu0  ;;  %v1475_v45 = vpop.f32.mrf.mxu1 }
 0x5ed   :  { %v1480_v43 = vadd.f32 %v1404_v38, %v4014_v40  ;;  %v1482_v54 = vadd.f32 %v1475_v45, %v4017_v16 }
 0x5ee   :  { %v1406_v36 = vpop.f32.mrf.mxu0  ;;  %v1477_v22 = vpop.f32.mrf.mxu1 }
 0x5ef   :  { %v1999_v44 = vmul.f32 -1.442695, %v1480_v43  ;;  %v1481_v60 = vadd.f32 %v1406_v36, %v4015_v30  ;;  %v1483_v18 = vadd.f32 %v1477_v22, %v4016_v17 }
 0x5f1   :  { %2146 = vpow2.f32 %v1999_v44  ;;  %v2000_v56 = vmul.f32 -1.442695, %v1481_v60  ;;  %v2001_v41 = vmul.f32 -1.442695, %v1483_v18  ;;  %v1876_v18 = vld [vmem:[%s3771_s4 + $0x70] sm:$0xff] }
 0x5f3   :  { %2148 = vpow2.f32 %v2000_v56 }
 0x5f4   :  { %2150 = vtanh.f32 %v1482_v54  ;;  %v1877_v54 = vld [vmem:[%s3771_s4 + $0x78] sm:$0xff] }
 0x5f5   :  { %2152 = vpow2.f32 %v2001_v41 }
 0x5fe   :  { %v2147_v39 = vpop.eup %2146 }
 0x5ff   :  { %v1487_v57 = vadd.f32 1.0, %v2147_v39  ;;  %v1875_v39 = vld [vmem:[%s3771_s4 + $0x68] sm:$0xff] }
 0x600   :  { %v2149_v37 = vpop.eup %2148 }
 0x601   :  { %2154 = vrcp.f32 %v1487_v57  ;;  %v1493_v38 = vadd.f32 1.0, %v2149_v37  ;;  %v2151_v43 = vpop.eup %2150  ;;  %v1874_v37 = vld [vmem:[%s3771_s4 + $0x60] sm:$0xff] }
 0x602   :  { %v2153_v40 = vpop.eup %2152 }
 0x603   :  { %2156 = vrcp.f32 %v1493_v38  ;;  %v1500_v30 = vadd.f32 1.0, %v2153_v40  ;;  %v1873_v38 = vld [vmem:[%s3771_s4 + $0x58] sm:$0xff]  ;;  %v1871_v40 = vld [vmem:[%s3771_s4 + $0x48] sm:$0xff] }
 0x605   :  { %2158 = vrcp.f32 %v1500_v30  ;;  %v1867_v30 = vld [vmem:[%s3771_s4 + $0x28] sm:$0xff] }
 0x60e   :  { %v2155_v44 = vpop.eup %2154 }
 0x60f   :  { %v1504_v36 = vmul.f32 %v2155_v44, %v2151_v43  ;;  %v1872_v43 = vld [vmem:[%s3771_s4 + $0x50] sm:$0xff]  ;;  %v1870_v44 = vld [vmem:[%s3771_s4 + $0x40] sm:$0xff] }
 0x610   :  { %v2157_v60 = vpop.eup %2156 }
 0x611   :  { %v1503_v56 = vmul.f32 %v2157_v60, %v3542_v19  ;;  %v1868_v60 = vld [vmem:[%s3771_s4 + $0x30] sm:$0xff] }
 0x612   :  { %v2159_v16 = vpop.eup %2158 }
 0x613   :  { %v3616_v17 = vadd.f32 %v1504_v36, %v1503_v56  ;;  %v1869_v36 = vld [vmem:[%s3771_s4 + $0x38] sm:$0xff]  ;;  %v1866_v56 = vld [vmem:[%s3771_s4 + $0x20] sm:$0xff] }
 0x615   :  { %2160 = vtanh.f32 %v3616_v17 }
 0x622   :  { %v2161_v22 = vpop.eup %2160 }
 0x623   :  { %v1507_v45 = vmul.f32 %v2161_v22, %v2159_v16  ;;  %v1864_v16 = vld [vmem:[%s3771_s4 + $0x10] sm:$0xff]  ;;  %v1863_v22 = vld [vmem:[%s3771_s4 + $0x8] sm:$0xff] }
 0x625   :  { %1580 = vmatmul.mubr.f32.vlgmr.msra.gmra.mxu0 %v1507_v45  ;;  %1651 = vmatmul.mubr.f32.vlgmr.msra.gmra.mxu1 %v1507_v45  ;;  %v1862_v45 = vld [vmem:[%s3771_s4] sm:$0xff] }
 0x626   :  { %1693 = vmatpush1.msra.mxu0 %v3090_v6  ;;  %1764 = vmatpush1.msra.mxu1 %v3096_v31  ;;  %v4018_v6 = vld [vmem:[#allocation7_spill] sm:$0xff]  ;;  %v4019_v31 = vld [vmem:[#allocation28_spill] sm:$0xff] }
 0x627   :  { %1694 = vmatprep.subr.mxu0 %v3102_v27  ;;  %1765 = vmatprep.subr.mxu1 %v3108_v26  ;;  %v4020_v27 = vld [vmem:[#allocation30_spill] sm:$0xff]  ;;  %v4021_v26 = vld [vmem:[#allocation31_spill] sm:$0xff] }
 0x628   :  { %1695 = vmatpush1.msra.mxu0 %v3114_v20  ;;  %1766 = vmatpush1.msra.mxu1 %v3120_v24  ;;  %v4022_v20 = vld [vmem:[#allocation29_spill] sm:$0xff]  ;;  %v4023_v24 = vld [vmem:[#allocation11_spill] sm:$0xff] }
 0x629   :  { %1696 = vmatprep.subr.mxu0 %v3126_v25  ;;  %1767 = vmatprep.subr.mxu1 %v3132_v32  ;;  %v4024_v25 = vld [vmem:[#allocation12_spill] sm:$0xff]  ;;  %v4025_v32 = vld [vmem:[#allocation13_spill] sm:$0xff] }
 0x62a   :  { %1697 = vmatpush1.msra.mxu0 %v3138_v23  ;;  %1768 = vmatpush1.msra.mxu1 %v3144_v29  ;;  %v4026_v23 = vld [vmem:[#allocation14_spill] sm:$0xff]  ;;  %v4027_v29 = vld [vmem:[#allocation15_spill] sm:$0xff] }
 0x62b   :  { %1698 = vmatprep.subr.mxu0 %v3150_v28  ;;  %1769 = vmatprep.subr.mxu1 %v3156_v35  ;;  %v4028_v28 = vld [vmem:[#allocation16_spill] sm:$0xff]  ;;  %v4029_v35 = vld [vmem:[#allocation17_spill] sm:$0xff] }
 0x62c   :  { %1699 = vmatpush1.msra.mxu0 %v3162_v34  ;;  %1770 = vmatpush1.msra.mxu1 %v3168_v42  ;;  %v4030_v34 = vld [vmem:[#allocation18_spill] sm:$0xff]  ;;  %v4031_v42 = vld [vmem:[#allocation19_spill] sm:$0xff] }
 0x62d   :  { %1700 = vmatprep.subr.mxu0 %v3174_v33  ;;  %1771 = vmatprep.subr.mxu1 %v3180_v58  ;;  %v4032_v33 = vld [vmem:[#allocation20_spill] sm:$0xff]  ;;  %v4033_v58 = vld [vmem:[#allocation21_spill] sm:$0xff] }
 0x62e   :  { %1701 = vmatpush1.msra.mxu0 %v3186_v59  ;;  %1772 = vmatpush1.msra.mxu1 %v3192_v61  ;;  %v4034_v59 = vmov 0.0   ;;  %v4035_v61 = vld [vmem:[#allocation22_spill] sm:$0xff] }
 0x62f   :  { %1702 = vmatprep.subr.mxu0 %v3971_v46  ;;  %1773 = vmatprep.subr.mxu1 %v3972_v47  ;;  %v4037_v47 = vld [vmem:[#allocation50_spill] sm:$0xff] }
 0x630   :  { %1703 = vmatpush1.msra.mxu0 %v3210_v0  ;;  %1774 = vmatpush1.msra.mxu1 %v3216_v21 }
 0x631   :  { %1704 = vmatprep.subr.mxu0 %v3222_v62  ;;  %1775 = vmatprep.subr.mxu1 %v3228_v15  ;;  %v4036_v15 = vld [vmem:[#allocation48_spill] sm:$0xff] }
 0x632   :  { %1705 = vmatpush1.msra.mxu0 %v3308_v48  ;;  %1776 = vmatpush1.msra.mxu1 %v3314_v49 }
 0x633   :  { %1706 = vmatprep.subr.mxu0 %v3320_v50  ;;  %1777 = vmatprep.subr.mxu1 %v3326_v52 }
 0x634   :  { %1707 = vmatpush1.msra.mxu0 %v3332_v53  ;;  %1778 = vmatpush1.msra.mxu1 %v3338_v55  ;;  %v4038_v53 = vld [vmem:[#allocation51_spill] sm:$0xff] }
 0x635   :  { %1708 = vmatprep.subr.mxu0 %v3344_v51  ;;  %1779 = vmatprep.subr.mxu1 %v3350_v63  ;;  %v4039_v51 = vld [vmem:[#allocation49_spill] sm:$0xff] }
 0x636   :  { %1709 = vmatpush1.msra.mxu0 %v3356_v1  ;;  %1780 = vmatpush1.msra.mxu1 %v3362_v2 }
 0x637   :  { %1710 = vmatprep.subr.mxu0 %v3368_v3  ;;  %1781 = vmatprep.subr.mxu1 %v3374_v4 }
 0x638   :  { %1711 = vmatpush1.msra.mxu0 %v3380_v5  ;;  %1782 = vmatpush1.msra.mxu1 %v3386_v7 }
 0x639   :  { %1712 = vmatprep.subr.mxu0 %v3392_v8  ;;  %1783 = vmatprep.subr.mxu1 %v3398_v9 }
 0x63a   :  { %1713 = vmatpush1.msra.mxu0 %v3404_v10  ;;  %1784 = vmatpush1.msra.mxu1 %v3410_v11 }
 0x63b   :  { %1714 = vmatprep.subr.mxu0 %v3416_v12  ;;  %1785 = vmatprep.subr.mxu1 %v3422_v13 }
 0x63c   :  { %1715 = vmatpush1.msra.mxu0 %v3428_v14  ;;  %1786 = vmatpush1.msra.mxu1 %v4018_v6 }
 0x63d   :  { %1716 = vmatprep.subr.mxu0 %v4019_v31  ;;  %1787 = vmatprep.subr.mxu1 %v4020_v27  ;;  %v4040_v31 = vld [vmem:[#allocation52_spill] sm:$0xff] }
 0x63e   :  { %1717 = vmatpush1.msra.mxu0 %v4021_v26  ;;  %1788 = vmatpush1.msra.mxu1 %v4022_v20 }
 0x63f   :  { %1718 = vmatprep.subr.mxu0 %v4023_v24  ;;  %1789 = vmatprep.subr.mxu1 %v4024_v25  ;;  %v4041_v24 = vld [vmem:[#allocation54_spill] sm:$0xff] }
 0x640   :  { %1719 = vmatpush1.msra.mxu0 %v4025_v32  ;;  %1790 = vmatpush1.msra.mxu1 %v4026_v23 }
 0x641   :  { %1720 = vmatprep.subr.mxu0 %v4027_v29  ;;  %1791 = vmatprep.subr.mxu1 %v4028_v28  ;;  %v4042_v28 = vld [vmem:[#allocation55_spill] sm:$0xff] }
 0x642   :  { %1721 = vmatpush1.msra.mxu0 %v4029_v35  ;;  %1792 = vmatpush1.msra.mxu1 %v4030_v34  ;;  %v4043_v34 = vld [vmem:[#allocation53_spill] sm:$0xff] }
 0x643   :  { %1722 = vmatprep.subr.mxu0 %v4031_v42  ;;  %1793 = vmatprep.subr.mxu1 %v4032_v33 }
 0x644   :  { %1723 = vmatpush1.msra.mxu0 %v4033_v58  ;;  %1756 = vmatprep.mubr.f32.mxu0 %v4034_v59 }
 0x645   :  { %1794 = vmatpush1.msra.mxu1 %v4035_v61  ;;  %1827 = vmatprep.mubr.f32.mxu1 %v4034_v59 }
 0x646   :  { %2026 = vmatprep.subr.mxu0 %v4034_v59 }
 0x6e5   :  { %v1581_v62 = vpop.f32.mrf.mxu0  ;;  %v1652_v49 = vpop.f32.mrf.mxu1 }
 0x6e6   :  { %v1657_v0 = vadd.f32 %v1581_v62, %v4036_v15  ;;  %v1659_v63 = vadd.f32 %v1652_v49, %v4039_v51  ;;  %v2008_v51 = vld [vmem:[%s3772_s5] ss:$0 sm:$0xff] }
 0x6e7   :  { %v1583_v21 = vpop.f32.mrf.mxu0  ;;  %v1654_v52 = vpop.f32.mrf.mxu1 }
 0x6e8   :  { %v2002_v46 = vmul.f32 -1.442695, %v1657_v0  ;;  %v1658_v48 = vadd.f32 %v1583_v21, %v4037_v47  ;;  %v1660_v55 = vadd.f32 %v1654_v52, %v4038_v53 }
 0x6ea   :  { %2162 = vpow2.f32 %v2002_v46  ;;  %v2003_v50 = vmul.f32 -1.442695, %v1658_v48  ;;  %v2004_v1 = vmul.f32 -1.442695, %v1660_v55 }
 0x6ec   :  { %2164 = vpow2.f32 %v2003_v50 }
 0x6ed   :  { %2166 = vtanh.f32 %v1659_v63 }
 0x6ee   :  { %2168 = vpow2.f32 %v2004_v1 }
 0x6f7   :  { %v2163_v2 = vpop.eup %2162 }
 0x6f8   :  { %v1664_v3 = vadd.f32 1.0, %v2163_v2 }
 0x6f9   :  { %v2165_v4 = vpop.eup %2164 }
 0x6fa   :  { %2170 = vrcp.f32 %v1664_v3  ;;  %v1670_v5 = vadd.f32 1.0, %v2165_v4  ;;  %v2167_v7 = vpop.eup %2166 }
 0x6fb   :  { %v2169_v8 = vpop.eup %2168 }
 0x6fc   :  { %2172 = vrcp.f32 %v1670_v5  ;;  %v1677_v12 = vadd.f32 1.0, %v2169_v8 }
 0x6fe   :  { %2174 = vrcp.f32 %v1677_v12 }
 0x707   :  { %v2171_v9 = vpop.eup %2170 }
 0x708   :  { %v1681_v10 = vmul.f32 %v2171_v9, %v2167_v7 }
 0x709   :  { %v2173_v11 = vpop.eup %2172 }
 0x70a   :  { %v1680_v13 = vmul.f32 %v2173_v11, %v3616_v17  ;;  %v1865_v17 = vld [vmem:[%s3771_s4 + $0x18] sm:$0xff] }
 0x70b   :  { %v2175_v19 = vpop.eup %2174 }
 0x70c   :  { %v3689_v14 = vadd.f32 %v1681_v10, %v1680_v13 }
 0x70e   :  { %2176 = vtanh.f32 %v3689_v14 }
 0x71b   :  { %v2177_v57 = vpop.eup %2176 }
 0x71c   :  { %v1684_v41 = vmul.f32 %v2177_v57, %v2175_v19 }
 0x71e   :  { %1757 = vmatmul.mubr.f32.vlgmr.msra.gmra.mxu0 %v1684_v41  ;;  %1828 = vmatmul.mubr.f32.vlgmr.msra.gmra.mxu1 %v1684_v41 }
 0x71f   :  { %2027 = vmatpush3.msra.mxu0 %v1877_v54  ;;  %2058 = vmatprep.mubr.msk.f32.mxu0 %vm2284_vm1, %v4034_v59 }
 0x720   :  { %2028 = vmatprep.subr.mxu0 %v4034_v59 }
 0x721   :  { %2029 = vmatpush3.msra.mxu0 %v1876_v18 }
 0x722   :  { %2030 = vmatprep.subr.mxu0 %v4034_v59 }
 0x723   :  { %2031 = vmatpush3.msra.mxu0 %v1875_v39 }
 0x724   :  { %2032 = vmatprep.subr.mxu0 %v4034_v59 }
 0x725   :  { %2033 = vmatpush3.msra.mxu0 %v1874_v37 }
 0x726   :  { %2034 = vmatprep.subr.mxu0 %v4034_v59 }
 0x727   :  { %2035 = vmatpush3.msra.mxu0 %v1873_v38 }
 0x728   :  { %2036 = vmatprep.subr.mxu0 %v4034_v59 }
 0x729   :  { %2037 = vmatpush3.msra.mxu0 %v1872_v43 }
 0x72a   :  { %2038 = vmatprep.subr.mxu0 %v4034_v59 }
 0x72b   :  { %2039 = vmatpush3.msra.mxu0 %v1871_v40 }
 0x72c   :  { %2040 = vmatprep.subr.mxu0 %v4034_v59 }
 0x72d   :  { %2041 = vmatpush3.msra.mxu0 %v1870_v44 }
 0x72e   :  { %2042 = vmatprep.subr.mxu0 %v4034_v59 }
 0x72f   :  { %2043 = vmatpush3.msra.mxu0 %v1869_v36 }
 0x730   :  { %2044 = vmatprep.subr.mxu0 %v4034_v59 }
 0x731   :  { %2045 = vmatpush3.msra.mxu0 %v1868_v60 }
 0x732   :  { %2046 = vmatprep.subr.mxu0 %v4034_v59 }
 0x733   :  { %2047 = vmatpush3.msra.mxu0 %v1867_v30 }
 0x734   :  { %2048 = vmatprep.subr.mxu0 %v4034_v59 }
 0x735   :  { %2049 = vmatpush3.msra.mxu0 %v1866_v56 }
 0x736   :  { %2050 = vmatprep.subr.mxu0 %v4034_v59 }
 0x737   :  { %2051 = vmatpush3.msra.mxu0 %v1865_v17 }
 0x738   :  { %2052 = vmatprep.subr.mxu0 %v4034_v59 }
 0x739   :  { %2053 = vmatpush3.msra.mxu0 %v1864_v16 }
 0x73a   :  { %2054 = vmatprep.subr.mxu0 %v4034_v59 }
 0x73b   :  { %2055 = vmatpush3.msra.mxu0 %v1863_v22 }
 0x73c   :  { %2056 = vmatprep.subr.mxu0 %v4034_v59 }
 0x73d   :  { %2057 = vmatpush3.msra.mxu0 %v1862_v45 }
 0x7de   :  { %v1758_v6 = vpop.f32.mrf.mxu0  ;;  %v1829_v32 = vpop.f32.mrf.mxu1 }
 0x7df   :  { %v1834_v27 = vadd.f32 %v1758_v6, %v4040_v31  ;;  %v1836_v42 = vadd.f32 %v1829_v32, %v4043_v34 }
 0x7e0   :  { %v1760_v26 = vpop.f32.mrf.mxu0  ;;  %v1831_v29 = vpop.f32.mrf.mxu1 }
 0x7e1   :  { %v2005_v20 = vmul.f32 -1.442695, %v1834_v27  ;;  %v1835_v25 = vadd.f32 %v1760_v26, %v4041_v24  ;;  %v1837_v35 = vadd.f32 %v1831_v29, %v4042_v28 }
 0x7e3   :  { %2178 = vpow2.f32 %v2005_v20  ;;  %v2006_v23 = vmul.f32 -1.442695, %v1835_v25  ;;  %v2007_v33 = vmul.f32 -1.442695, %v1837_v35 }
 0x7e5   :  { %2180 = vpow2.f32 %v2006_v23 }
 0x7e6   :  { %2182 = vtanh.f32 %v1836_v42 }
 0x7e7   :  { %2184 = vpow2.f32 %v2007_v33 }
 0x7f0   :  { %v2179_v58 = vpop.eup %2178 }
 0x7f1   :  { %v1841_v59 = vadd.f32 1.0, %v2179_v58 }
 0x7f2   :  { %v2181_v61 = vpop.eup %2180 }
 0x7f3   :  { %2186 = vrcp.f32 %v1841_v59  ;;  %v1847_v62 = vadd.f32 1.0, %v2181_v61  ;;  %v2183_v15 = vpop.eup %2182 }
 0x7f4   :  { %v2185_v0 = vpop.eup %2184 }
 0x7f5   :  { %2188 = vrcp.f32 %v1847_v62  ;;  %v1854_v48 = vadd.f32 1.0, %v2185_v0 }
 0x7f7   :  { %2190 = vrcp.f32 %v1854_v48 }
 0x800   :  { %v2187_v21 = vpop.eup %2186 }
 0x801   :  { %v1858_v46 = vmul.f32 %v2187_v21, %v2183_v15 }
 0x802   :  { %v2189_v47 = vpop.eup %2188 }
 0x803   :  { %v1857_v49 = vmul.f32 %v2189_v47, %v3689_v14 }
 0x804   :  { %v2191_v52 = vpop.eup %2190 }
 0x805   :  { %v1859_v50 = vadd.f32 %v1858_v46, %v1857_v49 }
 0x807   :  { %2192 = vtanh.f32 %v1859_v50 }
 0x814   :  { %v2193_v53 = vpop.eup %2192 }
 0x815   :  { %v1861_v55 = vmul.f32 %v2193_v53, %v2191_v52 }
 0x817   :  { %2059 = vmatmul.mubr.f32.vlgmr.msra.gmra.mxu0 %v1861_v55 }
 0x8d7   :  { %v1951_v63 = vpop.f32.mrf.mxu0 }
 0x8d8   :  { %v1952_v1 = vadd.f32 %v2008_v51, %v1951_v63 }
 0x8d9   :  { %v2060_v2 = vpop.f32.mrf.mxu0 }
 0x8da   :  { %1955 = vst [vmem:[%s3773_s6] sm:$0xff] %v1952_v1 }
 0x8db   :  { %1960 = vsyncpa [#allocation4], 1 }

</bundles_post_ra>
